<compile_context>
chip_gen: v7x
topology: tpu7x:2x2x1
jax: 0.10.0
libtpu: 0.0.40
codegen_flags: <defaults>
</compile_context>

<pallas_src>
from functools import lru_cache, partial

import jax
import jax.numpy as jnp
from jax import lax
from jax.experimental import pallas as pl
from jax.experimental.pallas import tpu as pltpu


_VMEM_LIMIT = 48 * 1024 * 1024   # below every chip's physical VMEM (v7x: 64 MiB)


# ---------------------------------------------------------------------------
# Fused 3x3 conv (stride=1, pad=1) + bias + ReLU (+ optional fused 2x2 pool).
# One image per grid step; bf16 MXU matmuls with f32 accumulation.
# ---------------------------------------------------------------------------
def _conv3x3_kernel(x_ref, w_ref, b_ref, *rest, H, W, C_in, C_out, pool_op):
    """x_ref  : (1, H, W, C_in)     unpadded bf16 NHWC image
       w_ref  : (3, 3*C_in, C_out)  bf16 weights; row i = kernel row, the
                                    contraction index is ordered (kcol j, cin)
       b_ref  : (1, C_out)          f32 bias
       o_ref  : (1, H*W, C_out)     bf16 lane-dense conv+ReLU output
       p_ref  : (1, H*W//4, C_out)  bf16 pooled output (only when pool_op)
       col_ref: (H+2, W, 3*C_in)    bf16 scratch: 3 zero-padded column windows
       acc_ref: (H*W, C_out)        f32 accumulator scratch
    """
    if pool_op is None:
        o_ref, col_ref, acc_ref = rest
    else:
        o_ref, p_ref, col_ref, acc_ref = rest

    Hp = H + 2
    K3 = 3 * C_in
    dt = col_ref.dtype
    x = x_ref[0]                                   # (H, W, C_in) bf16

    # Build the 3 column-shifted, zero-padded windows once.  This replaces the
    # per-layer HBM jnp.pad AND the 9 per-tap sublane relayouts of the old
    # kernel with 3 contiguous VMEM copies + tiny halo zeroing.
    zero_row = jnp.zeros((W, K3), dt)
    col_ref[0] = zero_row                                          # top halo
    col_ref[Hp - 1] = zero_row                                     # bottom halo
    col_ref[1:H + 1, :, C_in:2 * C_in] = x                         # centre j=1
    col_ref[1:H + 1, 1:, 0:C_in] = x[:, :W - 1, :]                 # left   j=0
    col_ref[1:H + 1, 0:1, 0:C_in] = jnp.zeros((H, 1, C_in), dt)
    col_ref[1:H + 1, :W - 1, 2 * C_in:] = x[:, 1:, :]              # right  j=2
    col_ref[1:H + 1, W - 1:W, 2 * C_in:] = jnp.zeros((H, 1, C_in), dt)

    # 3 MXU matmuls with K = 3*C_in; accumulator sees 1 write + 2 RMWs.
    for i in range(3):
        patch = col_ref[i:i + H].reshape(H * W, K3)          # rows of xp[i:i+H]
        d = jnp.dot(patch, w_ref[i], preferred_element_type=jnp.float32)
        if i == 0:
            acc_ref[...] = d
        else:
            acc_ref[...] += d

    # Fused bias + ReLU, lane-dense bf16 store.
    act = jnp.maximum(acc_ref[...] + b_ref[...], 0.0)              # f32 (HW, C)
    o_ref[0] = act.astype(o_ref.dtype)

    # Fused 2x2/stride-2 pool (pure VPU work hidden under the MXU-bound conv).
    if pool_op is not None:
        H2, W2 = H // 2, W // 2
        a4 = act.reshape(H2, 2, W2, 2, C_out)      # lane dim (C_out) unchanged
        if pool_op == "max":
            rowp = jnp.maximum(a4[:, 0], a4[:, 1])                 # (H2,W2,2,C)
            pooled = jnp.maximum(rowp[:, :, 0], rowp[:, :, 1])     # (H2,W2,C)
        else:                                       # avg
            rowp = a4[:, 0] + a4[:, 1]
            pooled = (rowp[:, :, 0] + rowp[:, :, 1]) * 0.25
        p_ref[0] = pooled.reshape(H2 * W2, C_out).astype(p_ref.dtype)


@lru_cache(maxsize=None)
def _conv3x3_call(B, H, W, C_in, C_out, pool_op):
    assert W >= 2 and H >= 2
    assert pool_op is None or (H % 2 == 0 and W % 2 == 0)
    Hp, K3, HW = H + 2, 3 * C_in, H * W
    kernel = partial(_conv3x3_kernel, H=H, W=W, C_in=C_in, C_out=C_out,
                     pool_op=pool_op)

    out_shape = [jax.ShapeDtypeStruct((B, HW, C_out), jnp.bfloat16)]
    out_specs = [pl.BlockSpec((1, HW, C_out), lambda b: (b, 0, 0))]
    if pool_op is not None:
        out_shape.append(jax.ShapeDtypeStruct((B, HW // 4, C_out), jnp.bfloat16))
        out_specs.append(pl.BlockSpec((1, HW // 4, C_out), lambda b: (b, 0, 0)))

    flops = 2 * B * HW * 9 * C_in * C_out
    bytes_accessed = (2 * B * HW * C_in + 2 * 9 * C_in * C_out + 4 * C_out
                      + 2 * B * HW * C_out
                      + (2 * B * (HW // 4) * C_out if pool_op is not None else 0))

    conv = pl.pallas_call(
        kernel,
        out_shape=tuple(out_shape),
        grid=(B,),
        in_specs=[
            pl.BlockSpec((1, H, W, C_in), lambda b: (b, 0, 0, 0)),
            pl.BlockSpec((3, K3, C_out), lambda b: (0, 0, 0)),
            pl.BlockSpec((1, C_out), lambda b: (0, 0)),
        ],
        out_specs=tuple(out_specs),
        scratch_shapes=[pltpu.VMEM((Hp, W, K3), jnp.bfloat16),
                        pltpu.VMEM((HW, C_out), jnp.float32)],
        compiler_params=pltpu.CompilerParams(
            dimension_semantics=("parallel",),
            vmem_limit_bytes=_VMEM_LIMIT),
        cost_estimate=pl.CostEstimate(flops=flops, transcendentals=0,
                                      bytes_accessed=bytes_accessed),
    )

    def fn(x_nhwc, w_oihw, bias):
        xb = x_nhwc.astype(jnp.bfloat16)
        # OIHW -> HWIO -> (kernel-row, (kernel-col, c_in), c_out) in bf16.
        w = jnp.transpose(w_oihw, (2, 3, 1, 0)).reshape(3, K3, C_out)
        w = w.astype(jnp.bfloat16)
        b2 = bias.reshape(1, C_out).astype(jnp.float32)
        outs = conv(xb, w, b2)
        if not isinstance(outs, (tuple, list)):
            outs = (outs,)
        act = outs[0].reshape(B, H, W, C_out)          # free HBM reshape
        if pool_op is None:
            return act
        return act, outs[1].reshape(B, H // 2, W // 2, C_out)

    return jax.jit(fn)


def conv3x3_relu(x_nhwc, w_oihw, bias, pool_op=None):
    B, H, W, C_in = x_nhwc.shape
    C_out = w_oihw.shape[0]
    return _conv3x3_call(B, H, W, C_in, C_out, pool_op)(x_nhwc, w_oihw, bias)


# ---------------------------------------------------------------------------
# First layer (C_in = 3): one K = 27 im2col matmul instead of 9 K=3 matmuls.
# ---------------------------------------------------------------------------
def _conv_first_kernel(x_ref, w_ref, b_ref, o_ref):
    o_ref[0] = jnp.maximum(
        jnp.dot(x_ref[0], w_ref[...], preferred_element_type=jnp.float32)
        + b_ref[...], 0.0).astype(o_ref.dtype)


@lru_cache(maxsize=None)
def _conv_first_call(B, H, W, C_in, C_out):
    K = 9 * C_in
    HW = H * W
    call = pl.pallas_call(
        _conv_first_kernel,
        out_shape=jax.ShapeDtypeStruct((B, HW, C_out), jnp.bfloat16),
        grid=(B,),
        in_specs=[pl.BlockSpec((1, HW, K), lambda b: (b, 0, 0)),
                  pl.BlockSpec((K, C_out), lambda b: (0, 0)),
                  pl.BlockSpec((1, C_out), lambda b: (0, 0))],
        out_specs=pl.BlockSpec((1, HW, C_out), lambda b: (b, 0, 0)),
        compiler_params=pltpu.CompilerParams(
            dimension_semantics=("parallel",),
            vmem_limit_bytes=_VMEM_LIMIT),
        cost_estimate=pl.CostEstimate(
            flops=2 * B * HW * K * C_out, transcendentals=0,
            bytes_accessed=2 * B * HW * (K + C_out) + 2 * K * C_out + 4 * C_out),
    )

    def fn(x_nhwc, w_oihw, bias):
        xb = x_nhwc.astype(jnp.bfloat16)
        xp = jnp.pad(xb, ((0, 0), (1, 1), (1, 1), (0, 0)))     # tiny: 3 channels
        patches = jnp.concatenate(
            [xp[:, i:i + H, j:j + W, :] for i in range(3) for j in range(3)],
            axis=-1).reshape(B, HW, K)
        w = jnp.transpose(w_oihw, (2, 3, 1, 0)).reshape(K, C_out)
        w = w.astype(jnp.bfloat16)
        b2 = bias.reshape(1, C_out).astype(jnp.float32)
        return call(patches, w, b2).reshape(B, H, W, C_out)

    return jax.jit(fn)


def conv3x3_relu_first(x_nhwc, w_oihw, bias):
    B, H, W, C_in = x_nhwc.shape
    return _conv_first_call(B, H, W, C_in, w_oihw.shape[0])(x_nhwc, w_oihw, bias)


# ---------------------------------------------------------------------------
# VGG19 network definition (matches the PyTorch module).
# ---------------------------------------------------------------------------
_VGG19_LAYERS = (
    # (param_name, C_in, C_out, feature_key, pool_key_or_None)
    ("conv1_1", 3, 64, "r11", None),
    ("conv1_2", 64, 64, "r12", "p1"),
    ("conv2_1", 64, 128, "r21", None),
    ("conv2_2", 128, 128, "r22", "p2"),
    ("conv3_1", 128, 256, "r31", None),
    ("conv3_2", 256, 256, "r32", None),
    ("conv3_3", 256, 256, "r33", None),
    ("conv3_4", 256, 256, "r34", "p3"),
    ("conv4_1", 256, 512, "r41", None),
    ("conv4_2", 512, 512, "r42", None),
    ("conv4_3", 512, 512, "r43", None),
    ("conv4_4", 512, 512, "r44", "p4"),
    ("conv5_1", 512, 512, "r51", None),
    ("conv5_2", 512, 512, "r52", None),
    ("conv5_3", 512, 512, "r53", None),
    ("conv5_4", 512, 512, "r54", "p5"),
)


def init_vgg19_params(key):
    """PyTorch nn.Conv2d default init: U(+-1/sqrt(fan_in)) for weight and bias."""
    params = {}
    for i, (name, c_in, c_out, _, _) in enumerate(_VGG19_LAYERS):
        kw, kb = jax.random.split(jax.random.fold_in(key, i))
        bound = 1.0 / float((c_in * 9) ** 0.5)
        params[name] = (
            jax.random.uniform(kw, (c_out, c_in, 3, 3), jnp.float32, -bound, bound),
            jax.random.uniform(kb, (c_out,), jnp.float32, -bound, bound),
        )
    return params


def vgg19_forward(x_nchw, params, pool="max", out_layout="NCHW"):
    """Pallas forward pass.  Returns the same dict of features as the PyTorch
    module.  out_layout='NCHW' (default) matches PyTorch exactly (f32 NCHW);
    out_layout='NHWC' skips the final relayout and returns bf16 NHWC for
    downstream TPU consumers (saves a full HBM pass per feature)."""
    h = jnp.transpose(x_nchw, (0, 2, 3, 1))        # NCHW -> NHWC exactly once
    feats = {}
    for idx, (name, _c_in, c_out, rkey, pkey) in enumerate(_VGG19_LAYERS):
        w, b = params[name]
        if idx == 0:
            act = conv3x3_relu_first(h, w, b)
            feats[rkey] = act
            h = act
        elif pkey is None:
            act = conv3x3_relu(h, w, b, pool_op=None)
            feats[rkey] = act
            h = act
        else:
            act, pooled = conv3x3_relu(h, w, b, pool_op=pool)
            feats[rkey] = act
            feats[pkey] = pooled
            h = pooled
    if out_layout == "NHWC":
        return feats
    # NCHW float32 restored only for the returned dict (PyTorch interface).
    return {k: jnp.transpose(v.astype(jnp.float32), (0, 3, 1, 2))
            for k, v in feats.items()}


# ---------------------------------------------------------------------------
# Pure-JAX reference (f32, HIGHEST precision) for correctness checking.
# ---------------------------------------------------------------------------
def vgg19_reference(x_nchw, params, pool="max"):
    feats = {}
    h = x_nchw
    for name, _c_in, _c_out, rkey, pkey in _VGG19_LAYERS:
        w, b = params[name]
        h = jax.nn.relu(
            lax.conv_general_dilated(
                h, w, (1, 1), [(1, 1), (1, 1)],
                dimension_numbers=("NCHW", "OIHW", "NCHW"),
                precision=lax.Precision.HIGHEST)
            + b[None, :, None, None])
        feats[rkey] = h
        if pkey is not None:
            if pool == "max":
                h = lax.reduce_window(h, -jnp.inf, lax.max,
                                      (1, 1, 2, 2), (1, 1, 2, 2), "VALID")
            else:
                h = lax.reduce_window(h, 0.0, lax.add,
                                      (1, 1, 2, 2), (1, 1, 2, 2), "VALID") * 0.25
            feats[pkey] = h
    return feats


if __name__ == "__main__":
    key = jax.random.PRNGKey(0)
    k_x, k_p = jax.random.split(key)

    # Small input consistent with the module: 3 input channels, batch 2,
    # spatial 32 (the minimum that keeps all five 2x2 pools non-degenerate).
    B, H, W = 2, 32, 32
    x = jax.random.normal(k_x, (B, 3, H, W), jnp.float32)
    params = init_vgg19_params(k_p)

    out = vgg19_forward(x, params, pool="max")
    out = jax.block_until_ready(out)

    ref = jax.jit(lambda xx, pp: vgg19_reference(xx, pp, pool="max"))(x, params)
    ref = jax.block_until_ready(ref)

    for name, r in ref.items():
        o = out[name]
        assert o.shape == r.shape, (name, o.shape, r.shape)
        err = float(jnp.sqrt(jnp.sum((o - r) ** 2)))
        scale = float(jnp.sqrt(jnp.sum(r ** 2))) + 1e-12
        # bf16 activations/weights with f32 accumulation give ~1% relative
        # error after 16 layers; structural bugs would be O(100%).
        assert err / scale < 6e-2, (name, err / scale)

    print("KERNEL_OK")
</pallas_src>

<mosaic_0001>
module attributes {stable_mosaic.version = 11 : i64} {
  func.func @_conv_first_kernel(%arg0: i32, %arg1: memref<1x1024x27xbf16, #tpu.memory_space<vmem>>, %arg2: memref<27x64xbf16, #tpu.memory_space<vmem>>, %arg3: memref<1x64xf32, #tpu.memory_space<vmem>>, %arg4: memref<1x1024x64xbf16, #tpu.memory_space<vmem>>) attributes {dimension_semantics = [#tpu.dimension_semantics<parallel>], iteration_bounds = array<i64: 2>, scalar_prefetch = 0 : i64, scratch_operands = 0 : i64, tpu.core_type = #tpu.core_type<tc>, window_params = [{transform_indices = @transform_0, window_bounds = array<i64: 1, 1024, 27>}, {pipeline_mode = #tpu.pipeline_mode<synchronous>, transform_indices = @transform_1, window_bounds = array<i64: 27, 64>}, {pipeline_mode = #tpu.pipeline_mode<synchronous>, transform_indices = @transform_2, window_bounds = array<i64: 1, 64>}, {transform_indices = @transform_3, window_bounds = array<i64: 1, 1024, 64>}]} {
    %c0 = arith.constant 0 : index
    %c0_0 = arith.constant 0 : index
    %c0_1 = arith.constant 0 : index
    %0 = vector.load %arg1[%c0, %c0_0, %c0_1] : memref<1x1024x27xbf16, #tpu.memory_space<vmem>>, vector<1x1024x27xbf16>
    %1 = vector.shape_cast %0 : vector<1x1024x27xbf16> to vector<1024x27xbf16>
    %c0_2 = arith.constant 0 : index
    %c0_3 = arith.constant 0 : index
    %2 = vector.load %arg2[%c0_2, %c0_3] : memref<27x64xbf16, #tpu.memory_space<vmem>>, vector<27x64xbf16>
    %cst = arith.constant dense<0.000000e+00> : vector<1024x64xf32>
    %3 = tpu.matmul %1, %2, %cst {dimension_numbers = #tpu.dot_dimension_numbers<[1], [0], [0], [1], [0, 0, 1, 1], [], []>} : vector<1024x27xbf16>, vector<27x64xbf16>, vector<1024x64xf32> -> vector<1024x64xf32>
    %c0_4 = arith.constant 0 : index
    %c0_5 = arith.constant 0 : index
    %4 = vector.load %arg3[%c0_4, %c0_5] : memref<1x64xf32, #tpu.memory_space<vmem>>, vector<1x64xf32>
    %5 = vector.broadcast %4 : vector<1x64xf32> to vector<1024x64xf32>
    %6 = arith.addf %3, %5 : vector<1024x64xf32>
    %cst_6 = arith.constant 0.000000e+00 : f32
    %7 = vector.broadcast %cst_6 : f32 to vector<1024x64xf32>
    %8 = arith.maximumf %6, %7 : vector<1024x64xf32>
    %9 = arith.truncf %8 : vector<1024x64xf32> to vector<1024x64xbf16>
    %c0_7 = arith.constant 0 : index
    %c0_8 = arith.constant 0 : index
    %c0_9 = arith.constant 0 : index
    %10 = vector.load %arg4[%c0_7, %c0_8, %c0_9] : memref<1x1024x64xbf16, #tpu.memory_space<vmem>>, vector<1x1024x64xbf16>
    %11 = vector.shape_cast %10 : vector<1x1024x64xbf16> to vector<1024x64xbf16>
    %12 = vector.shape_cast %9 : vector<1024x64xbf16> to vector<1x1024x64xbf16>
    tpu.vector_store %arg4[%c0_7, %c0_8, %c0_9], %12 {strides = array<i32>} : memref<1x1024x64xbf16, #tpu.memory_space<vmem>>, vector<1x1024x64xbf16>,
    return
  }
  func.func @transform_0(%arg0: i32) -> (i32, i32, i32) {
    %c0_i32 = arith.constant 0 : i32
    %c0_i32_0 = arith.constant 0 : i32
    %c0_i32_1 = arith.constant 0 : i32
    return %arg0, %c0_i32, %c0_i32_0 : i32, i32, i32
  }
  func.func @transform_1(%arg0: i32) -> (i32, i32) {
    %c0_i32 = arith.constant 0 : i32
    %c0_i32_0 = arith.constant 0 : i32
    %c0_i32_1 = arith.constant 0 : i32
    return %c0_i32, %c0_i32_0 : i32, i32
  }
  func.func @transform_2(%arg0: i32) -> (i32, i32) {
    %c0_i32 = arith.constant 0 : i32
    %c0_i32_0 = arith.constant 0 : i32
    %c0_i32_1 = arith.constant 0 : i32
    return %c0_i32, %c0_i32_0 : i32, i32
  }
  func.func @transform_3(%arg0: i32) -> (i32, i32, i32) {
    %c0_i32 = arith.constant 0 : i32
    %c0_i32_0 = arith.constant 0 : i32
    %c0_i32_1 = arith.constant 0 : i32
    return %arg0, %c0_i32, %c0_i32_0 : i32, i32, i32
  }
}

</mosaic_0001>

<bundles_post_ra>
// kernel: fn.1
= control target key start
LH: loop header
LB: loop body
LE: loop exit
PB: predicated region body
PF: predicated region fallthrough
CT: control target
= control target key end

     0   :  { %8 = vsyncpa [#allocation3], 0  ;;  %s3670_s0 = inlined_call_operand.vmem [shape: bf16[2,1024,27], index: 0, kind: input, shape index: {}]   ;;  %s3671_s1 = inlined_call_operand.vmem [shape: bf16[27,64], index: 1, kind: input, shape index: {}]   ;;  %s3672_s2 = inlined_call_operand.vmem [shape: f32[1,64], index: 2, kind: input, shape index: {}]   ;;  %s3673_s3 = inlined_call_operand.hbm [shape: bf16[2,1024,64], index: 3, kind: output, shape index: {}]  }
   0x1   :  { %10 = vsyncpa [#allocation3 + $0x1], 0  ;;  %s3030_s12 = smov 0   ;;  %s3032_s13 = smov 0  }
   0x2   :  { %s3034_s14 = smov 0   ;;  %s3036_s15 = smov 0  }
   0x3 LB: > { %s3051_s16 = sadd.s32 4294967295, %s3004_s15   ;;  %s2230_s17 = sadd.s32 4294967294, %s3004_s15   ;;  %s3004_s15 = sphi %s3036_s15, %s3679_s15   ;;  %s3000_s14 = sphi %s3034_s14, %s3678_s14   ;;  %s2996_s13 = sphi %s3032_s13, %s3677_s13   ;;  %s2992_s12 = sphi %s3030_s12, %s3676_s12  }
   0x4   : > { %s3055_s18 = sadd.s32 1, %s3004_s15   ;;  %s91_s19 = sadd.s32 1, %s3000_s14 }
   0x5   : > { %s88_s20 = ssub.s32 %s3004_s15, %s3055_s18  ;;  %p101_p0 = scmp.ne.s32.totalorder %s3000_s14, %s2996_s13 }
   0x6   : > { %p89_p1 = scmp.eq.s32.totalorder %s88_s20, 0  ;;  %p102_p2 = scmp.eq.s32.totalorder %s3051_s16, 1 }
   0x7   : > { %p107_p3 = scmp.ne.s32.totalorder %s2996_s13, %s2992_s12  ;;  %p108_p4 = scmp.eq.s32.totalorder %s2230_s17, 1 }
   0x8   : > { %s3066_s21 = scalar_select %p89_p1, %s3000_s14, %s91_s19  }
   0x9   : > { %p3068_p5 = por %p102_p2, %p101_p0  ;;  %p3072_p6 = por %p108_p4, %p107_p3 }
   0xa   : > { %p2233_p7 = scmp.ge.s32.totalorder %s3004_s15, 1  ;;  %p140_p8 = scmp.lt.s32.totalorder %s3004_s15, 3 }
   0xc   : > { %p141_p9 = pnand %p2233_p7, %p140_p8 }
   0xd   : > { %v2875_v0 = vld [vmem:[%s3671_s1] sm:$0xff] (!%p141_p9)   ;;  %vm833_vm0 = vcmask (!%p141_p9), 1044480   ;;  %v2876_v1 = vld [vmem:[%s3671_s1 + $0x8] sm:$0x3f] (!%p141_p9)   ;;  %vm834_vm1 = vcmask (!%p141_p9), 1045504   ;;  %p164_p10 = scmp.lt.s32.totalorder (!%p141_p9), %s3051_s16, 1 }
   0xe   : > { %144 = sbr.rel (%p141_p9) target bundleno = 384 (0x180), region = 32  ;;  %2697 = vmatprep.subr.bf16.mxu0 (!%p141_p9), %v2875_v0  ;;  %2829 = vmatprep.subr.bf16.mxu1 (!%p141_p9), %v2875_v0  ;;  %v3006_v2 = vmov (!%p141_p9), 65535   ;;  %vm640_vm2 = vcmask (!%p141_p9), 220160   ;;  %s161_s6 = sand.u32 (!%p141_p9), 1, %s2996_s13   ;;  %vm2025_vm3 = vcmask (!%p141_p9), 519168  }
   0xf   : > { %2698 = vmatpush3.bf16.msra.mxu0 (!%p141_p9), %v2875_v0  ;;  %2831 = vmatpush3.bf16.msra.mxu1 (!%p141_p9), %v2875_v0  ;;  %v835_v3 = vsel (!%p141_p9), %vm833_vm0, 4294967295, %v3006_v2  ;;  %s2234_s9 = sshll.u32 (!%p141_p9), %s161_s6, 9  ;;  %s2630_s19 = sshll.u32 (!%p141_p9), %s3051_s16, 13 }
  0x10   : > { %v836_v4 = vsel (!%p141_p9), %vm834_vm1, %v835_v3, 0  ;;  %s3235_s10 = scalar_lea.vmem (!%p141_p9), [#allocation2], %s2234_s9  ;;  %s3613_s25 = scalar_lea.hbm (!%p141_p9), %s3673_s3, %s2630_s19 }
  0x11   : > { %v838_v5 = vand.u32 (!%p141_p9), %v2876_v1, %v836_v4  ;;  %s2168_s20 = sshll.u32 (!%p141_p9), %s3235_s10, 4  ;;  %s3629_s26 = scalar_lea.sflag (!%p141_p9), [#allocation3], %s161_s6  ;;  %s3615_s20 = int_to_ptr.vmem [resolvable:$true] %s2168_s20 }
  0x12   : > { %s2942_s27 = scalar_lea.vmem (!%p141_p9), %s3615_s20, 8192 }
  0x13   : > { %2699 = vmatprep.subr.bf16.mxu0 (!%p141_p9), %v838_v5  ;;  %2830 = vmatprep.subr.bf16.mxu1 (!%p141_p9), %v838_v5  ;;  %p2943_p11 = scmp.ne.s32.totalorder (!%p141_p9), %s3615_s20, %s2942_s27 }
  0x14   : > { %2700 = vmatpush3.bf16.msra.mxu0 (!%p141_p9), %v838_v5  ;;  %2832 = vmatpush3.bf16.msra.mxu1 (!%p141_p9), %v838_v5 }
  0x15   : > { %s165_s28 = scalar_select %p164_p10, %s3051_s16, 1 }
  0x16   : > { %p2944_p12 = pnand %p2943_p11, %p3068_p5 }
  0x17   : > { %s2501_s29 = sshll.u32 %s165_s28, 9  ;;  %s3007_s28 = smov [#allocation2]  }
  0x18   : > { %s3089_s5 = scalar_lea.vmem %s3670_s0, %s2501_s29  ;;  %p2945_p13 = pneg %p2944_p12 }
  0x19   : > { %v2877_v6 = vld [vmem:[%s3089_s5] sm:$0xff]   ;;  %v2879_v8 = vld [vmem:[%s3089_s5 + $0x8] sm:$0xff]   ;;  %v2881_v10 = vld [vmem:[%s3089_s5 + $0x10] sm:$0xff]   ;;  %s2946_s29 = sshll.u32 %s3007_s28, 4  ;;  %s2947_s29 = int_to_ptr.vmem [resolvable:$false] %s2946_s29 }
  0x1a   : > { %v2878_v7 = vld [vmem:[%s3089_s5 + $0x100] sm:$0xff]   ;;  %2701 = vmatprep.mubr.msk.bf16.mxu0 %vm640_vm2, %v2877_v6  ;;  %v2880_v9 = vld [vmem:[%s3089_s5 + $0x108] sm:$0xff]   ;;  %v2882_v11 = vld [vmem:[%s3089_s5 + $0x110] sm:$0xff]   ;;  %s2948_s30 = scalar_lea.vmem %s2947_s29, 16384  ;;  %p2949_p0 = scmp.lt.s32.totalorder %s3615_s20, %s2947_s29 }
  0x1b   : > { %2765 = vmatprep.mubr.msk.bf16.mxu1 %vm640_vm2, %v2878_v7  ;;  %2702 = vmatmul.mubr.msk.bf16.vlgmr.msra.gmra.mrb[0].mxu0 %vm640_vm2, %v2879_v8  ;;  %v2883_v12 = vld [vmem:[%s3089_s5 + $0x18] sm:$0xff]   ;;  %v2885_v14 = vld [vmem:[%s3089_s5 + $0x20] sm:$0xff]   ;;  %v2887_v16 = vld [vmem:[%s3089_s5 + $0x28] sm:$0xff]   ;;  %p2950_p1 = scmp.lt.s32.totalorder %s2948_s30, %s2942_s27 }
  0x1c   : > { %2766 = vmatmul.mubr.msk.bf16.vlgmr.msra.gmra.mrb[0].mxu1 %vm640_vm2, %v2880_v9  ;;  %2705 = vmatprep.mubr.msk.bf16.mxu0 %vm640_vm2, %v2881_v10  ;;  %v2884_v13 = vld [vmem:[%s3089_s5 + $0x118] sm:$0xff]   ;;  %v2886_v15 = vld [vmem:[%s3089_s5 + $0x120] sm:$0xff]   ;;  %v2888_v17 = vld [vmem:[%s3089_s5 + $0x128] sm:$0xff]  }
  0x1d   : > { %2769 = vmatprep.mubr.msk.bf16.mxu1 %vm640_vm2, %v2882_v11  ;;  %v2889_v18 = vld [vmem:[%s3089_s5 + $0x30] sm:$0xff]   ;;  %v2891_v20 = vld [vmem:[%s3089_s5 + $0x38] sm:$0xff]   ;;  %v2893_v22 = vld [vmem:[%s3089_s5 + $0x40] sm:$0xff]   ;;  %p2951_p2 = por %p2950_p1, %p2949_p0 }
  0x1e   : > { %v2890_v19 = vld [vmem:[%s3089_s5 + $0x130] sm:$0xff]   ;;  %v2892_v21 = vld [vmem:[%s3089_s5 + $0x138] sm:$0xff]   ;;  %v2894_v23 = vld [vmem:[%s3089_s5 + $0x140] sm:$0xff]  }
  0x1f   : > { %v2895_v24 = vld [vmem:[%s3089_s5 + $0x48] sm:$0xff]   ;;  %v2897_v26 = vld [vmem:[%s3089_s5 + $0x50] sm:$0xff]   ;;  %v2899_v28 = vld [vmem:[%s3089_s5 + $0x58] sm:$0xff]   ;;  %p2952_p3 = pnand %p2951_p2, %p2945_p13 }
  0x20   : > { %v2896_v25 = vld [vmem:[%s3089_s5 + $0x148] sm:$0xff]   ;;  %v2898_v27 = vld [vmem:[%s3089_s5 + $0x150] sm:$0xff]   ;;  %v2900_v29 = vld [vmem:[%s3089_s5 + $0x158] sm:$0xff]  }
  0x21   : > { %v2901_v30 = vld [vmem:[%s3089_s5 + $0x60] sm:$0xff]   ;;  %v2903_v32 = vld [vmem:[%s3089_s5 + $0x68] sm:$0xff]   ;;  %v2905_v34 = vld [vmem:[%s3089_s5 + $0x70] sm:$0xff]  }
  0x22   : > { %v2902_v31 = vld [vmem:[%s3089_s5 + $0x160] sm:$0xff]   ;;  %v2904_v33 = vld [vmem:[%s3089_s5 + $0x168] sm:$0xff]   ;;  %v2906_v35 = vld [vmem:[%s3089_s5 + $0x170] sm:$0xff]  }
  0x23   : > { %2706 = vmatmul.mubr.msk.bf16.gmra.mrb[4].mxu0 %vm640_vm2, %v2883_v12  ;;  %v2907_v36 = vld [vmem:[%s3089_s5 + $0x78] sm:$0xff]   ;;  %v2909_v38 = vld [vmem:[%s3089_s5 + $0x80] sm:$0xff]   ;;  %v2911_v40 = vld [vmem:[%s3089_s5 + $0x88] sm:$0xff]  }
  0x24   : > { %2770 = vmatmul.mubr.msk.bf16.gmra.mrb[4].mxu1 %vm640_vm2, %v2884_v13  ;;  %2709 = vmatprep.mubr.msk.bf16.mxu0 %vm640_vm2, %v2885_v14  ;;  %v2908_v37 = vld [vmem:[%s3089_s5 + $0x178] sm:$0xff]   ;;  %v2910_v39 = vld [vmem:[%s3089_s5 + $0x180] sm:$0xff]   ;;  %v2912_v41 = vld [vmem:[%s3089_s5 + $0x188] sm:$0xff]  }
  0x25   : > { %2773 = vmatprep.mubr.msk.bf16.mxu1 %vm640_vm2, %v2886_v15  ;;  %v2913_v42 = vld [vmem:[%s3089_s5 + $0x90] sm:$0xff]   ;;  %v2915_v44 = vld [vmem:[%s3089_s5 + $0x98] sm:$0xff]   ;;  %v2917_v46 = vld [vmem:[%s3089_s5 + $0xa0] sm:$0xff]  }
  0x26   : > { %v2914_v43 = vld [vmem:[%s3089_s5 + $0x190] sm:$0xff]   ;;  %v2916_v45 = vld [vmem:[%s3089_s5 + $0x198] sm:$0xff]   ;;  %v2918_v47 = vld [vmem:[%s3089_s5 + $0x1a0] sm:$0xff]  }
  0x27   : > { %v2919_v48 = vld [vmem:[%s3089_s5 + $0xa8] sm:$0xff]   ;;  %v2921_v50 = vld [vmem:[%s3089_s5 + $0xb0] sm:$0xff]   ;;  %v2923_v52 = vld [vmem:[%s3089_s5 + $0xb8] sm:$0xff]  }
  0x28   : > { %v2920_v49 = vld [vmem:[%s3089_s5 + $0x1a8] sm:$0xff]   ;;  %v2922_v51 = vld [vmem:[%s3089_s5 + $0x1b0] sm:$0xff]   ;;  %v2924_v53 = vld [vmem:[%s3089_s5 + $0x1b8] sm:$0xff]  }
  0x29   : > { %v2925_v54 = vld [vmem:[%s3089_s5 + $0xc0] sm:$0xff]   ;;  %v2927_v56 = vld [vmem:[%s3089_s5 + $0xc8] sm:$0xff]   ;;  %v2929_v58 = vld [vmem:[%s3089_s5 + $0xd0] sm:$0xff]  }
  0x2a   : > { %v2926_v55 = vld [vmem:[%s3089_s5 + $0x1c0] sm:$0xff]   ;;  %v2928_v57 = vld [vmem:[%s3089_s5 + $0x1c8] sm:$0xff]   ;;  %v2930_v59 = vld [vmem:[%s3089_s5 + $0x1d0] sm:$0xff]  }
  0x2b   : > { %2710 = vmatmul.mubr.msk.bf16.gmra.mrb[8].mxu0 %vm640_vm2, %v2887_v16  ;;  %v2931_v60 = vld [vmem:[%s3089_s5 + $0xd8] sm:$0xff]   ;;  %v2933_v62 = vld [vmem:[%s3089_s5 + $0xe0] sm:$0xff]   ;;  %v2935_v0 = vld [vmem:[%s3089_s5 + $0xe8] sm:$0xff]  }
  0x2c   : > { %2774 = vmatmul.mubr.msk.bf16.gmra.mrb[8].mxu1 %vm640_vm2, %v2888_v17  ;;  %2713 = vmatprep.mubr.msk.bf16.mxu0 %vm640_vm2, %v2889_v18  ;;  %v2932_v61 = vld [vmem:[%s3089_s5 + $0x1d8] sm:$0xff]   ;;  %v2934_v63 = vld [vmem:[%s3089_s5 + $0x1e0] sm:$0xff]   ;;  %v2936_v1 = vld [vmem:[%s3089_s5 + $0x1e8] sm:$0xff]  }
  0x2d   : > { %2777 = vmatprep.mubr.msk.bf16.mxu1 %vm640_vm2, %v2890_v19  ;;  %v2937_v2 = vld [vmem:[%s3089_s5 + $0xf0] sm:$0xff]   ;;  %v2939_v4 = vld [vmem:[%s3089_s5 + $0xf8] sm:$0xff]   ;;  %v3223_v6 = vld [vmem:[%s3672_s2] ss:$0 sm:$0xff] }
  0x2e   : > { %v2938_v3 = vld [vmem:[%s3089_s5 + $0x1f0] sm:$0xff]   ;;  %v2940_v5 = vld [vmem:[%s3089_s5 + $0x1f8] sm:$0xff]  }
  0x33   : > { %2714 = vmatmul.mubr.msk.bf16.gmra.mrb[12].mxu0 %vm640_vm2, %v2891_v20 }
  0x34   : > { %2778 = vmatmul.mubr.msk.bf16.gmra.mrb[12].mxu1 %vm640_vm2, %v2892_v21  ;;  %2717 = vmatprep.mubr.msk.bf16.mxu0 %vm640_vm2, %v2893_v22 }
  0x35   : > { %2781 = vmatprep.mubr.msk.bf16.mxu1 %vm640_vm2, %v2894_v23 }
  0x3b   : > { %2718 = vmatmul.mubr.msk.bf16.gmra.mrb[16].mxu0 %vm640_vm2, %v2895_v24 }
  0x3c   : > { %2782 = vmatmul.mubr.msk.bf16.gmra.mrb[16].mxu1 %vm640_vm2, %v2896_v25  ;;  %2721 = vmatprep.mubr.msk.bf16.mxu0 %vm640_vm2, %v2897_v26 }
  0x3d   : > { %2785 = vmatprep.mubr.msk.bf16.mxu1 %vm640_vm2, %v2898_v27 }
  0x43   : > { %2722 = vmatmul.mubr.msk.bf16.gmra.mrb[20].mxu0 %vm640_vm2, %v2899_v28 }
  0x44   : > { %2786 = vmatmul.mubr.msk.bf16.gmra.mrb[20].mxu1 %vm640_vm2, %v2900_v29  ;;  %2725 = vmatprep.mubr.msk.bf16.mxu0 %vm640_vm2, %v2901_v30 }
  0x45   : > { %2789 = vmatprep.mubr.msk.bf16.mxu1 %vm640_vm2, %v2902_v31 }
  0x4b   : > { %2726 = vmatmul.mubr.msk.bf16.gmra.mrb[24].mxu0 %vm640_vm2, %v2903_v32 }
  0x4c   : > { %2790 = vmatmul.mubr.msk.bf16.gmra.mrb[24].mxu1 %vm640_vm2, %v2904_v33  ;;  %2729 = vmatprep.mubr.msk.bf16.mxu0 %vm640_vm2, %v2905_v34 }
  0x4d   : > { %2793 = vmatprep.mubr.msk.bf16.mxu1 %vm640_vm2, %v2906_v35 }
  0x53   : > { %2730 = vmatmul.mubr.msk.bf16.gmra.mrb[28].mxu0 %vm640_vm2, %v2907_v36 }
  0x54   : > { %2794 = vmatmul.mubr.msk.bf16.gmra.mrb[28].mxu1 %vm640_vm2, %v2908_v37  ;;  %2733 = vmatprep.mubr.msk.bf16.mxu0 %vm640_vm2, %v2909_v38 }
  0x55   : > { %2797 = vmatprep.mubr.msk.bf16.mxu1 %vm640_vm2, %v2910_v39 }
  0x5b   : > { %2734 = vmatmul.mubr.msk.bf16.gmra.mrb[32].mxu0 %vm640_vm2, %v2911_v40 }
  0x5c   : > { %2798 = vmatmul.mubr.msk.bf16.gmra.mrb[32].mxu1 %vm640_vm2, %v2912_v41  ;;  %2737 = vmatprep.mubr.msk.bf16.mxu0 %vm640_vm2, %v2913_v42 }
  0x5d   : > { %2801 = vmatprep.mubr.msk.bf16.mxu1 %vm640_vm2, %v2914_v43 }
  0x63   : > { %2738 = vmatmul.mubr.msk.bf16.gmra.mrb[36].mxu0 %vm640_vm2, %v2915_v44 }
  0x64   : > { %2802 = vmatmul.mubr.msk.bf16.gmra.mrb[36].mxu1 %vm640_vm2, %v2916_v45  ;;  %2741 = vmatprep.mubr.msk.bf16.mxu0 %vm640_vm2, %v2917_v46 }
  0x65   : > { %2805 = vmatprep.mubr.msk.bf16.mxu1 %vm640_vm2, %v2918_v47 }
  0x6b   : > { %2742 = vmatmul.mubr.msk.bf16.gmra.mrb[40].mxu0 %vm640_vm2, %v2919_v48 }
  0x6c   : > { %2806 = vmatmul.mubr.msk.bf16.gmra.mrb[40].mxu1 %vm640_vm2, %v2920_v49  ;;  %2745 = vmatprep.mubr.msk.bf16.mxu0 %vm640_vm2, %v2921_v50 }
  0x6d   : > { %2809 = vmatprep.mubr.msk.bf16.mxu1 %vm640_vm2, %v2922_v51 }
  0x73   : > { %2746 = vmatmul.mubr.msk.bf16.gmra.mrb[44].mxu0 %vm640_vm2, %v2923_v52 }
  0x74   : > { %2810 = vmatmul.mubr.msk.bf16.gmra.mrb[44].mxu1 %vm640_vm2, %v2924_v53  ;;  %2749 = vmatprep.mubr.msk.bf16.mxu0 %vm640_vm2, %v2925_v54 }
  0x75   : > { %2813 = vmatprep.mubr.msk.bf16.mxu1 %vm640_vm2, %v2926_v55 }
  0x7b   : > { %2750 = vmatmul.mubr.msk.bf16.gmra.mrb[48].mxu0 %vm640_vm2, %v2927_v56 }
  0x7c   : > { %2814 = vmatmul.mubr.msk.bf16.gmra.mrb[48].mxu1 %vm640_vm2, %v2928_v57  ;;  %2753 = vmatprep.mubr.msk.bf16.mxu0 %vm640_vm2, %v2929_v58 }
  0x7d   : > { %2817 = vmatprep.mubr.msk.bf16.mxu1 %vm640_vm2, %v2930_v59 }
  0x83   : > { %2754 = vmatmul.mubr.msk.bf16.gmra.mrb[52].mxu0 %vm640_vm2, %v2931_v60 }
  0x84   : > { %2818 = vmatmul.mubr.msk.bf16.gmra.mrb[52].mxu1 %vm640_vm2, %v2932_v61  ;;  %2757 = vmatprep.mubr.msk.bf16.mxu0 %vm640_vm2, %v2933_v62 }
  0x85   : > { %2821 = vmatprep.mubr.msk.bf16.mxu1 %vm640_vm2, %v2934_v63 }
  0x8b   : > { %2758 = vmatmul.mubr.msk.bf16.gmra.mrb[56].mxu0 %vm640_vm2, %v2935_v0 }
  0x8c   : > { %2822 = vmatmul.mubr.msk.bf16.gmra.mrb[56].mxu1 %vm640_vm2, %v2936_v1  ;;  %2761 = vmatprep.mubr.msk.bf16.mxu0 %vm640_vm2, %v2937_v2 }
  0x8d   : > { %2825 = vmatprep.mubr.msk.bf16.mxu1 %vm640_vm2, %v2938_v3 }
  0x93   : > { %2762 = vmatmul.mubr.msk.bf16.gmra.mrb[60].mxu0 %vm640_vm2, %v2939_v4 }
  0x94   : > { %2826 = vmatmul.mubr.msk.bf16.gmra.mrb[60].mxu1 %vm640_vm2, %v2940_v5 }
  0xee   : > { %v2703_v7 = vpop.f32.mrb[0].mxu0 }
  0xef   : > { %v883_v8 = vadd.f32 %v2703_v7, %v3223_v6  ;;  %v2767_v9 = vpop.f32.mrb[0].mxu1  ;;  %v874_v10 = vpop.f32.mrb[1].mxu0 }
  0xf0   : > { %v1139_v11 = vadd.f32 %v2767_v9, %v3223_v6  ;;  %v875_v12 = vadd.f32 %v3223_v6, %v874_v10  ;;  %v1130_v13 = vpop.f32.mrb[1].mxu1  ;;  %v2704_v14 = vpop.f32.mrb[2].mxu0 }
  0xf1   : > { %v1387_v15 = vmax.f32 %v883_v8, 0.0  ;;  %v1131_v16 = vadd.f32 %v3223_v6, %v1130_v13  ;;  %v886_v17 = vadd.f32 %v2704_v14, %v3223_v6  ;;  %v2768_v18 = vpop.f32.mrb[2].mxu1  ;;  %v877_v19 = vpop.f32.mrb[3].mxu0 }
  0xf2   : > { %v1451_v20 = vmax.f32 %v1139_v11, 0.0  ;;  %v1385_v21 = vmax.f32 %v875_v12, 0.0  ;;  %v1142_v22 = vadd.f32 %v2768_v18, %v3223_v6  ;;  %v878_v23 = vadd.f32 %v3223_v6, %v877_v19  ;;  %v1133_v24 = vpop.f32.mrb[3].mxu1 }
  0xf3   : > { %v2504_v25 = vpack.c.bf16 %v1387_v15, %v1387_v15  ;;  %v1449_v26 = vmax.f32 %v1131_v16, 0.0  ;;  %v1388_v27 = vmax.f32 %v886_v17, 0.0  ;;  %v1134_v28 = vadd.f32 %v3223_v6, %v1133_v24 }
  0xf4   : > { %v2568_v29 = vpack.c.bf16 %v1451_v20, %v1451_v20  ;;  %v2502_v30 = vpack.c.bf16 %v1385_v21, %v1385_v21  ;;  %v1452_v31 = vmax.f32 %v1142_v22, 0.0  ;;  %v1386_v32 = vmax.f32 %v878_v23, 0.0 }
  0xf5   : > { %2028 = vst.msk [vmem:[%s3235_s10 + $0x8] sm:$0xf] %vm2025_vm3, %v2504_v25  ;;  %v2566_v33 = vpack.c.bf16 %v1449_v26, %v1449_v26  ;;  %v2505_v34 = vpack.c.bf16 %v1388_v27, %v1388_v27  ;;  %v1450_v35 = vmax.f32 %v1134_v28, 0.0 }
  0xf6   : > { %2092 = vst.msk [vmem:[%s3235_s10 + $0x108] sm:$0xf] %vm2025_vm3, %v2568_v29  ;;  %2026 = vst.msk [vmem:[%s3235_s10] sm:$0xf] %vm2025_vm3, %v2502_v30  ;;  %v2569_v36 = vpack.c.bf16 %v1452_v31, %v1452_v31  ;;  %v2503_v37 = vpack.c.bf16 %v1386_v32, %v1386_v32  ;;  %v2707_v38 = vpop.f32.mrb[4].mxu0 }
  0xf7   : > { %2090 = vst.msk [vmem:[%s3235_s10 + $0x100] sm:$0xf] %vm2025_vm3, %v2566_v33  ;;  %2029 = vst.msk [vmem:[%s3235_s10 + $0xc] sm:$0xf] %vm2025_vm3, %v2505_v34  ;;  %v2567_v39 = vpack.c.bf16 %v1450_v35, %v1450_v35  ;;  %v899_v40 = vadd.f32 %v2707_v38, %v3223_v6  ;;  %v2771_v41 = vpop.f32.mrb[4].mxu1  ;;  %v890_v42 = vpop.f32.mrb[5].mxu0 }
  0xf8   : > { %2093 = vst.msk [vmem:[%s3235_s10 + $0x10c] sm:$0xf] %vm2025_vm3, %v2569_v36  ;;  %2027 = vst.msk [vmem:[%s3235_s10 + $0x4] sm:$0xf] %vm2025_vm3, %v2503_v37  ;;  %v1155_v43 = vadd.f32 %v2771_v41, %v3223_v6  ;;  %v891_v44 = vadd.f32 %v3223_v6, %v890_v42  ;;  %v1146_v45 = vpop.f32.mrb[5].mxu1  ;;  %v2708_v46 = vpop.f32.mrb[6].mxu0 }
  0xf9   : > { %2091 = vst.msk [vmem:[%s3235_s10 + $0x104] sm:$0xf] %vm2025_vm3, %v2567_v39  ;;  %v1391_v47 = vmax.f32 %v899_v40, 0.0  ;;  %v1147_v48 = vadd.f32 %v3223_v6, %v1146_v45  ;;  %v902_v49 = vadd.f32 %v2708_v46, %v3223_v6  ;;  %v2772_v50 = vpop.f32.mrb[6].mxu1  ;;  %v893_v51 = vpop.f32.mrb[7].mxu0 }
  0xfa   : > { %v1455_v52 = vmax.f32 %v1155_v43, 0.0  ;;  %v1389_v53 = vmax.f32 %v891_v44, 0.0  ;;  %v1158_v54 = vadd.f32 %v2772_v50, %v3223_v6  ;;  %v894_v55 = vadd.f32 %v3223_v6, %v893_v51  ;;  %v1149_v56 = vpop.f32.mrb[7].mxu1 }
  0xfb   : > { %v2508_v57 = vpack.c.bf16 %v1391_v47, %v1391_v47  ;;  %v1453_v58 = vmax.f32 %v1147_v48, 0.0  ;;  %v1392_v59 = vmax.f32 %v902_v49, 0.0  ;;  %v1150_v60 = vadd.f32 %v3223_v6, %v1149_v56 }
  0xfc   : > { %v2572_v61 = vpack.c.bf16 %v1455_v52, %v1455_v52  ;;  %v2506_v62 = vpack.c.bf16 %v1389_v53, %v1389_v53  ;;  %v1456_v63 = vmax.f32 %v1158_v54, 0.0  ;;  %v1390_v0 = vmax.f32 %v894_v55, 0.0 }
  0xfd   : > { %2032 = vst.msk [vmem:[%s3235_s10 + $0x18] sm:$0xf] %vm2025_vm3, %v2508_v57  ;;  %v2570_v1 = vpack.c.bf16 %v1453_v58, %v1453_v58  ;;  %v2509_v2 = vpack.c.bf16 %v1392_v59, %v1392_v59  ;;  %v1454_v3 = vmax.f32 %v1150_v60, 0.0 }
  0xfe   : > { %2096 = vst.msk [vmem:[%s3235_s10 + $0x118] sm:$0xf] %vm2025_vm3, %v2572_v61  ;;  %2030 = vst.msk [vmem:[%s3235_s10 + $0x10] sm:$0xf] %vm2025_vm3, %v2506_v62  ;;  %v2573_v4 = vpack.c.bf16 %v1456_v63, %v1456_v63  ;;  %v2507_v5 = vpack.c.bf16 %v1390_v0, %v1390_v0  ;;  %v2711_v7 = vpop.f32.mrb[8].mxu0 }
  0xff   : > { %2094 = vst.msk [vmem:[%s3235_s10 + $0x110] sm:$0xf] %vm2025_vm3, %v2570_v1  ;;  %2033 = vst.msk [vmem:[%s3235_s10 + $0x1c] sm:$0xf] %vm2025_vm3, %v2509_v2  ;;  %v2571_v8 = vpack.c.bf16 %v1454_v3, %v1454_v3  ;;  %v915_v9 = vadd.f32 %v2711_v7, %v3223_v6  ;;  %v2775_v10 = vpop.f32.mrb[8].mxu1  ;;  %v906_v11 = vpop.f32.mrb[9].mxu0 }
 0x100   : > { %2097 = vst.msk [vmem:[%s3235_s10 + $0x11c] sm:$0xf] %vm2025_vm3, %v2573_v4  ;;  %2031 = vst.msk [vmem:[%s3235_s10 + $0x14] sm:$0xf] %vm2025_vm3, %v2507_v5  ;;  %v1171_v12 = vadd.f32 %v2775_v10, %v3223_v6  ;;  %v907_v13 = vadd.f32 %v3223_v6, %v906_v11  ;;  %v1162_v14 = vpop.f32.mrb[9].mxu1  ;;  %v2712_v15 = vpop.f32.mrb[10].mxu0 }
 0x101   : > { %2095 = vst.msk [vmem:[%s3235_s10 + $0x114] sm:$0xf] %vm2025_vm3, %v2571_v8  ;;  %v1395_v16 = vmax.f32 %v915_v9, 0.0  ;;  %v1163_v17 = vadd.f32 %v3223_v6, %v1162_v14  ;;  %v918_v18 = vadd.f32 %v2712_v15, %v3223_v6  ;;  %v2776_v19 = vpop.f32.mrb[10].mxu1  ;;  %v909_v20 = vpop.f32.mrb[11].mxu0 }
 0x102   : > { %v1459_v21 = vmax.f32 %v1171_v12, 0.0  ;;  %v1393_v22 = vmax.f32 %v907_v13, 0.0  ;;  %v1174_v23 = vadd.f32 %v2776_v19, %v3223_v6  ;;  %v910_v24 = vadd.f32 %v3223_v6, %v909_v20  ;;  %v1165_v25 = vpop.f32.mrb[11].mxu1 }
 0x103   : > { %v2512_v26 = vpack.c.bf16 %v1395_v16, %v1395_v16  ;;  %v1457_v27 = vmax.f32 %v1163_v17, 0.0  ;;  %v1396_v28 = vmax.f32 %v918_v18, 0.0  ;;  %v1166_v29 = vadd.f32 %v3223_v6, %v1165_v25 }
 0x104   : > { %v2576_v30 = vpack.c.bf16 %v1459_v21, %v1459_v21  ;;  %v2510_v31 = vpack.c.bf16 %v1393_v22, %v1393_v22  ;;  %v1460_v32 = vmax.f32 %v1174_v23, 0.0  ;;  %v1394_v33 = vmax.f32 %v910_v24, 0.0 }
 0x105   : > { %2036 = vst.msk [vmem:[%s3235_s10 + $0x28] sm:$0xf] %vm2025_vm3, %v2512_v26  ;;  %v2574_v34 = vpack.c.bf16 %v1457_v27, %v1457_v27  ;;  %v2513_v35 = vpack.c.bf16 %v1396_v28, %v1396_v28  ;;  %v1458_v36 = vmax.f32 %v1166_v29, 0.0 }
 0x106   : > { %2100 = vst.msk [vmem:[%s3235_s10 + $0x128] sm:$0xf] %vm2025_vm3, %v2576_v30  ;;  %2034 = vst.msk [vmem:[%s3235_s10 + $0x20] sm:$0xf] %vm2025_vm3, %v2510_v31  ;;  %v2577_v37 = vpack.c.bf16 %v1460_v32, %v1460_v32  ;;  %v2511_v38 = vpack.c.bf16 %v1394_v33, %v1394_v33  ;;  %v2715_v39 = vpop.f32.mrb[12].mxu0 }
 0x107   : > { %2098 = vst.msk [vmem:[%s3235_s10 + $0x120] sm:$0xf] %vm2025_vm3, %v2574_v34  ;;  %2037 = vst.msk [vmem:[%s3235_s10 + $0x2c] sm:$0xf] %vm2025_vm3, %v2513_v35  ;;  %v2575_v40 = vpack.c.bf16 %v1458_v36, %v1458_v36  ;;  %v931_v41 = vadd.f32 %v2715_v39, %v3223_v6  ;;  %v2779_v42 = vpop.f32.mrb[12].mxu1  ;;  %v922_v43 = vpop.f32.mrb[13].mxu0 }
 0x108   : > { %2101 = vst.msk [vmem:[%s3235_s10 + $0x12c] sm:$0xf] %vm2025_vm3, %v2577_v37  ;;  %2035 = vst.msk [vmem:[%s3235_s10 + $0x24] sm:$0xf] %vm2025_vm3, %v2511_v38  ;;  %v1187_v44 = vadd.f32 %v2779_v42, %v3223_v6  ;;  %v923_v45 = vadd.f32 %v3223_v6, %v922_v43  ;;  %v1178_v46 = vpop.f32.mrb[13].mxu1  ;;  %v2716_v47 = vpop.f32.mrb[14].mxu0 }
 0x109   : > { %2099 = vst.msk [vmem:[%s3235_s10 + $0x124] sm:$0xf] %vm2025_vm3, %v2575_v40  ;;  %v1399_v48 = vmax.f32 %v931_v41, 0.0  ;;  %v1179_v49 = vadd.f32 %v3223_v6, %v1178_v46  ;;  %v934_v50 = vadd.f32 %v2716_v47, %v3223_v6  ;;  %v2780_v51 = vpop.f32.mrb[14].mxu1  ;;  %v925_v52 = vpop.f32.mrb[15].mxu0 }
 0x10a   : > { %v1463_v53 = vmax.f32 %v1187_v44, 0.0  ;;  %v1397_v54 = vmax.f32 %v923_v45, 0.0  ;;  %v1190_v55 = vadd.f32 %v2780_v51, %v3223_v6  ;;  %v926_v56 = vadd.f32 %v3223_v6, %v925_v52  ;;  %v1181_v57 = vpop.f32.mrb[15].mxu1 }
 0x10b   : > { %v2516_v58 = vpack.c.bf16 %v1399_v48, %v1399_v48  ;;  %v1461_v59 = vmax.f32 %v1179_v49, 0.0  ;;  %v1400_v60 = vmax.f32 %v934_v50, 0.0  ;;  %v1182_v61 = vadd.f32 %v3223_v6, %v1181_v57 }
 0x10c   : > { %v2580_v62 = vpack.c.bf16 %v1463_v53, %v1463_v53  ;;  %v2514_v63 = vpack.c.bf16 %v1397_v54, %v1397_v54  ;;  %v1464_v0 = vmax.f32 %v1190_v55, 0.0  ;;  %v1398_v1 = vmax.f32 %v926_v56, 0.0 }
 0x10d   : > { %2040 = vst.msk [vmem:[%s3235_s10 + $0x38] sm:$0xf] %vm2025_vm3, %v2516_v58  ;;  %v2578_v2 = vpack.c.bf16 %v1461_v59, %v1461_v59  ;;  %v2517_v3 = vpack.c.bf16 %v1400_v60, %v1400_v60  ;;  %v1462_v4 = vmax.f32 %v1182_v61, 0.0 }
 0x10e   : > { %2104 = vst.msk [vmem:[%s3235_s10 + $0x138] sm:$0xf] %vm2025_vm3, %v2580_v62  ;;  %2038 = vst.msk [vmem:[%s3235_s10 + $0x30] sm:$0xf] %vm2025_vm3, %v2514_v63  ;;  %v2581_v5 = vpack.c.bf16 %v1464_v0, %v1464_v0  ;;  %v2515_v7 = vpack.c.bf16 %v1398_v1, %v1398_v1  ;;  %v2719_v8 = vpop.f32.mrb[16].mxu0 }
 0x10f   : > { %2102 = vst.msk [vmem:[%s3235_s10 + $0x130] sm:$0xf] %vm2025_vm3, %v2578_v2  ;;  %2041 = vst.msk [vmem:[%s3235_s10 + $0x3c] sm:$0xf] %vm2025_vm3, %v2517_v3  ;;  %v2579_v9 = vpack.c.bf16 %v1462_v4, %v1462_v4  ;;  %v947_v10 = vadd.f32 %v2719_v8, %v3223_v6  ;;  %v2783_v11 = vpop.f32.mrb[16].mxu1  ;;  %v938_v12 = vpop.f32.mrb[17].mxu0 }
 0x110   : > { %2105 = vst.msk [vmem:[%s3235_s10 + $0x13c] sm:$0xf] %vm2025_vm3, %v2581_v5  ;;  %2039 = vst.msk [vmem:[%s3235_s10 + $0x34] sm:$0xf] %vm2025_vm3, %v2515_v7  ;;  %v1203_v13 = vadd.f32 %v2783_v11, %v3223_v6  ;;  %v939_v14 = vadd.f32 %v3223_v6, %v938_v12  ;;  %v1194_v15 = vpop.f32.mrb[17].mxu1  ;;  %v2720_v16 = vpop.f32.mrb[18].mxu0 }
 0x111   : > { %2103 = vst.msk [vmem:[%s3235_s10 + $0x134] sm:$0xf] %vm2025_vm3, %v2579_v9  ;;  %v1403_v17 = vmax.f32 %v947_v10, 0.0  ;;  %v1195_v18 = vadd.f32 %v3223_v6, %v1194_v15  ;;  %v950_v19 = vadd.f32 %v2720_v16, %v3223_v6  ;;  %v2784_v20 = vpop.f32.mrb[18].mxu1  ;;  %v941_v21 = vpop.f32.mrb[19].mxu0 }
 0x112   : > { %v1467_v22 = vmax.f32 %v1203_v13, 0.0  ;;  %v1401_v23 = vmax.f32 %v939_v14, 0.0  ;;  %v1206_v24 = vadd.f32 %v2784_v20, %v3223_v6  ;;  %v942_v25 = vadd.f32 %v3223_v6, %v941_v21  ;;  %v1197_v26 = vpop.f32.mrb[19].mxu1 }
 0x113   : > { %v2520_v27 = vpack.c.bf16 %v1403_v17, %v1403_v17  ;;  %v1465_v28 = vmax.f32 %v1195_v18, 0.0  ;;  %v1404_v29 = vmax.f32 %v950_v19, 0.0  ;;  %v1198_v30 = vadd.f32 %v3223_v6, %v1197_v26 }
 0x114   : > { %v2584_v31 = vpack.c.bf16 %v1467_v22, %v1467_v22  ;;  %v2518_v32 = vpack.c.bf16 %v1401_v23, %v1401_v23  ;;  %v1468_v33 = vmax.f32 %v1206_v24, 0.0  ;;  %v1402_v34 = vmax.f32 %v942_v25, 0.0 }
 0x115   : > { %2044 = vst.msk [vmem:[%s3235_s10 + $0x48] sm:$0xf] %vm2025_vm3, %v2520_v27  ;;  %v2582_v35 = vpack.c.bf16 %v1465_v28, %v1465_v28  ;;  %v2521_v36 = vpack.c.bf16 %v1404_v29, %v1404_v29  ;;  %v1466_v37 = vmax.f32 %v1198_v30, 0.0 }
 0x116   : > { %2108 = vst.msk [vmem:[%s3235_s10 + $0x148] sm:$0xf] %vm2025_vm3, %v2584_v31  ;;  %2042 = vst.msk [vmem:[%s3235_s10 + $0x40] sm:$0xf] %vm2025_vm3, %v2518_v32  ;;  %v2585_v38 = vpack.c.bf16 %v1468_v33, %v1468_v33  ;;  %v2519_v39 = vpack.c.bf16 %v1402_v34, %v1402_v34  ;;  %v2723_v40 = vpop.f32.mrb[20].mxu0 }
 0x117   : > { %2106 = vst.msk [vmem:[%s3235_s10 + $0x140] sm:$0xf] %vm2025_vm3, %v2582_v35  ;;  %2045 = vst.msk [vmem:[%s3235_s10 + $0x4c] sm:$0xf] %vm2025_vm3, %v2521_v36  ;;  %v2583_v41 = vpack.c.bf16 %v1466_v37, %v1466_v37  ;;  %v963_v42 = vadd.f32 %v2723_v40, %v3223_v6  ;;  %v2787_v43 = vpop.f32.mrb[20].mxu1  ;;  %v954_v44 = vpop.f32.mrb[21].mxu0 }
 0x118   : > { %2109 = vst.msk [vmem:[%s3235_s10 + $0x14c] sm:$0xf] %vm2025_vm3, %v2585_v38  ;;  %2043 = vst.msk [vmem:[%s3235_s10 + $0x44] sm:$0xf] %vm2025_vm3, %v2519_v39  ;;  %v1219_v45 = vadd.f32 %v2787_v43, %v3223_v6  ;;  %v955_v46 = vadd.f32 %v3223_v6, %v954_v44  ;;  %v1210_v47 = vpop.f32.mrb[21].mxu1  ;;  %v2724_v48 = vpop.f32.mrb[22].mxu0 }
 0x119   : > { %2107 = vst.msk [vmem:[%s3235_s10 + $0x144] sm:$0xf] %vm2025_vm3, %v2583_v41  ;;  %v1407_v49 = vmax.f32 %v963_v42, 0.0  ;;  %v1211_v50 = vadd.f32 %v3223_v6, %v1210_v47  ;;  %v966_v51 = vadd.f32 %v2724_v48, %v3223_v6  ;;  %v2788_v52 = vpop.f32.mrb[22].mxu1  ;;  %v957_v53 = vpop.f32.mrb[23].mxu0 }
 0x11a   : > { %v1471_v54 = vmax.f32 %v1219_v45, 0.0  ;;  %v1405_v55 = vmax.f32 %v955_v46, 0.0  ;;  %v1222_v56 = vadd.f32 %v2788_v52, %v3223_v6  ;;  %v958_v57 = vadd.f32 %v3223_v6, %v957_v53  ;;  %v1213_v58 = vpop.f32.mrb[23].mxu1 }
 0x11b   : > { %v2524_v59 = vpack.c.bf16 %v1407_v49, %v1407_v49  ;;  %v1469_v60 = vmax.f32 %v1211_v50, 0.0  ;;  %v1408_v61 = vmax.f32 %v966_v51, 0.0  ;;  %v1214_v62 = vadd.f32 %v3223_v6, %v1213_v58 }
 0x11c   : > { %v2588_v63 = vpack.c.bf16 %v1471_v54, %v1471_v54  ;;  %v2522_v0 = vpack.c.bf16 %v1405_v55, %v1405_v55  ;;  %v1472_v1 = vmax.f32 %v1222_v56, 0.0  ;;  %v1406_v2 = vmax.f32 %v958_v57, 0.0 }
 0x11d   : > { %2048 = vst.msk [vmem:[%s3235_s10 + $0x58] sm:$0xf] %vm2025_vm3, %v2524_v59  ;;  %v2586_v3 = vpack.c.bf16 %v1469_v60, %v1469_v60  ;;  %v2525_v4 = vpack.c.bf16 %v1408_v61, %v1408_v61  ;;  %v1470_v5 = vmax.f32 %v1214_v62, 0.0 }
 0x11e   : > { %2112 = vst.msk [vmem:[%s3235_s10 + $0x158] sm:$0xf] %vm2025_vm3, %v2588_v63  ;;  %2046 = vst.msk [vmem:[%s3235_s10 + $0x50] sm:$0xf] %vm2025_vm3, %v2522_v0  ;;  %v2589_v7 = vpack.c.bf16 %v1472_v1, %v1472_v1  ;;  %v2523_v8 = vpack.c.bf16 %v1406_v2, %v1406_v2  ;;  %v2727_v9 = vpop.f32.mrb[24].mxu0 }
 0x11f   : > { %2110 = vst.msk [vmem:[%s3235_s10 + $0x150] sm:$0xf] %vm2025_vm3, %v2586_v3  ;;  %2049 = vst.msk [vmem:[%s3235_s10 + $0x5c] sm:$0xf] %vm2025_vm3, %v2525_v4  ;;  %v2587_v10 = vpack.c.bf16 %v1470_v5, %v1470_v5  ;;  %v979_v11 = vadd.f32 %v2727_v9, %v3223_v6  ;;  %v2791_v12 = vpop.f32.mrb[24].mxu1  ;;  %v970_v13 = vpop.f32.mrb[25].mxu0 }
 0x120   : > { %2113 = vst.msk [vmem:[%s3235_s10 + $0x15c] sm:$0xf] %vm2025_vm3, %v2589_v7  ;;  %2047 = vst.msk [vmem:[%s3235_s10 + $0x54] sm:$0xf] %vm2025_vm3, %v2523_v8  ;;  %v1235_v14 = vadd.f32 %v2791_v12, %v3223_v6  ;;  %v971_v15 = vadd.f32 %v3223_v6, %v970_v13  ;;  %v1226_v16 = vpop.f32.mrb[25].mxu1  ;;  %v2728_v17 = vpop.f32.mrb[26].mxu0 }
 0x121   : > { %2111 = vst.msk [vmem:[%s3235_s10 + $0x154] sm:$0xf] %vm2025_vm3, %v2587_v10  ;;  %v1411_v18 = vmax.f32 %v979_v11, 0.0  ;;  %v1227_v19 = vadd.f32 %v3223_v6, %v1226_v16  ;;  %v982_v20 = vadd.f32 %v2728_v17, %v3223_v6  ;;  %v2792_v21 = vpop.f32.mrb[26].mxu1  ;;  %v973_v22 = vpop.f32.mrb[27].mxu0 }
 0x122   : > { %v1475_v23 = vmax.f32 %v1235_v14, 0.0  ;;  %v1409_v24 = vmax.f32 %v971_v15, 0.0  ;;  %v1238_v25 = vadd.f32 %v2792_v21, %v3223_v6  ;;  %v974_v26 = vadd.f32 %v3223_v6, %v973_v22  ;;  %v1229_v27 = vpop.f32.mrb[27].mxu1 }
 0x123   : > { %v2528_v28 = vpack.c.bf16 %v1411_v18, %v1411_v18  ;;  %v1473_v29 = vmax.f32 %v1227_v19, 0.0  ;;  %v1412_v30 = vmax.f32 %v982_v20, 0.0  ;;  %v1230_v31 = vadd.f32 %v3223_v6, %v1229_v27 }
 0x124   : > { %v2592_v32 = vpack.c.bf16 %v1475_v23, %v1475_v23  ;;  %v2526_v33 = vpack.c.bf16 %v1409_v24, %v1409_v24  ;;  %v1476_v34 = vmax.f32 %v1238_v25, 0.0  ;;  %v1410_v35 = vmax.f32 %v974_v26, 0.0 }
 0x125   : > { %2052 = vst.msk [vmem:[%s3235_s10 + $0x68] sm:$0xf] %vm2025_vm3, %v2528_v28  ;;  %v2590_v36 = vpack.c.bf16 %v1473_v29, %v1473_v29  ;;  %v2529_v37 = vpack.c.bf16 %v1412_v30, %v1412_v30  ;;  %v1474_v38 = vmax.f32 %v1230_v31, 0.0 }
 0x126   : > { %2116 = vst.msk [vmem:[%s3235_s10 + $0x168] sm:$0xf] %vm2025_vm3, %v2592_v32  ;;  %2050 = vst.msk [vmem:[%s3235_s10 + $0x60] sm:$0xf] %vm2025_vm3, %v2526_v33  ;;  %v2593_v39 = vpack.c.bf16 %v1476_v34, %v1476_v34  ;;  %v2527_v40 = vpack.c.bf16 %v1410_v35, %v1410_v35  ;;  %v2731_v41 = vpop.f32.mrb[28].mxu0 }
 0x127   : > { %2114 = vst.msk [vmem:[%s3235_s10 + $0x160] sm:$0xf] %vm2025_vm3, %v2590_v36  ;;  %2053 = vst.msk [vmem:[%s3235_s10 + $0x6c] sm:$0xf] %vm2025_vm3, %v2529_v37  ;;  %v2591_v42 = vpack.c.bf16 %v1474_v38, %v1474_v38  ;;  %v995_v43 = vadd.f32 %v2731_v41, %v3223_v6  ;;  %v2795_v44 = vpop.f32.mrb[28].mxu1  ;;  %v986_v45 = vpop.f32.mrb[29].mxu0 }
 0x128   : > { %2117 = vst.msk [vmem:[%s3235_s10 + $0x16c] sm:$0xf] %vm2025_vm3, %v2593_v39  ;;  %2051 = vst.msk [vmem:[%s3235_s10 + $0x64] sm:$0xf] %vm2025_vm3, %v2527_v40  ;;  %v1251_v46 = vadd.f32 %v2795_v44, %v3223_v6  ;;  %v987_v47 = vadd.f32 %v3223_v6, %v986_v45  ;;  %v1242_v48 = vpop.f32.mrb[29].mxu1  ;;  %v2732_v49 = vpop.f32.mrb[30].mxu0 }
 0x129   : > { %2115 = vst.msk [vmem:[%s3235_s10 + $0x164] sm:$0xf] %vm2025_vm3, %v2591_v42  ;;  %v1415_v50 = vmax.f32 %v995_v43, 0.0  ;;  %v1243_v51 = vadd.f32 %v3223_v6, %v1242_v48  ;;  %v998_v52 = vadd.f32 %v2732_v49, %v3223_v6  ;;  %v2796_v53 = vpop.f32.mrb[30].mxu1  ;;  %v989_v54 = vpop.f32.mrb[31].mxu0 }
 0x12a   : > { %v1479_v55 = vmax.f32 %v1251_v46, 0.0  ;;  %v1413_v56 = vmax.f32 %v987_v47, 0.0  ;;  %v1254_v57 = vadd.f32 %v2796_v53, %v3223_v6  ;;  %v990_v58 = vadd.f32 %v3223_v6, %v989_v54  ;;  %v1245_v59 = vpop.f32.mrb[31].mxu1 }
 0x12b   : > { %v2532_v60 = vpack.c.bf16 %v1415_v50, %v1415_v50  ;;  %v1477_v61 = vmax.f32 %v1243_v51, 0.0  ;;  %v1416_v62 = vmax.f32 %v998_v52, 0.0  ;;  %v1246_v63 = vadd.f32 %v3223_v6, %v1245_v59 }
 0x12c   : > { %v2596_v0 = vpack.c.bf16 %v1479_v55, %v1479_v55  ;;  %v2530_v1 = vpack.c.bf16 %v1413_v56, %v1413_v56  ;;  %v1480_v2 = vmax.f32 %v1254_v57, 0.0  ;;  %v1414_v3 = vmax.f32 %v990_v58, 0.0 }
 0x12d   : > { %2056 = vst.msk [vmem:[%s3235_s10 + $0x78] sm:$0xf] %vm2025_vm3, %v2532_v60  ;;  %v2594_v4 = vpack.c.bf16 %v1477_v61, %v1477_v61  ;;  %v2533_v5 = vpack.c.bf16 %v1416_v62, %v1416_v62  ;;  %v1478_v7 = vmax.f32 %v1246_v63, 0.0 }
 0x12e   : > { %2120 = vst.msk [vmem:[%s3235_s10 + $0x178] sm:$0xf] %vm2025_vm3, %v2596_v0  ;;  %2054 = vst.msk [vmem:[%s3235_s10 + $0x70] sm:$0xf] %vm2025_vm3, %v2530_v1  ;;  %v2597_v8 = vpack.c.bf16 %v1480_v2, %v1480_v2  ;;  %v2531_v9 = vpack.c.bf16 %v1414_v3, %v1414_v3  ;;  %v2735_v10 = vpop.f32.mrb[32].mxu0 }
 0x12f   : > { %2118 = vst.msk [vmem:[%s3235_s10 + $0x170] sm:$0xf] %vm2025_vm3, %v2594_v4  ;;  %2057 = vst.msk [vmem:[%s3235_s10 + $0x7c] sm:$0xf] %vm2025_vm3, %v2533_v5  ;;  %v2595_v11 = vpack.c.bf16 %v1478_v7, %v1478_v7  ;;  %v1011_v12 = vadd.f32 %v2735_v10, %v3223_v6  ;;  %v2799_v13 = vpop.f32.mrb[32].mxu1  ;;  %v1002_v14 = vpop.f32.mrb[33].mxu0 }
 0x130   : > { %2121 = vst.msk [vmem:[%s3235_s10 + $0x17c] sm:$0xf] %vm2025_vm3, %v2597_v8  ;;  %2055 = vst.msk [vmem:[%s3235_s10 + $0x74] sm:$0xf] %vm2025_vm3, %v2531_v9  ;;  %v1267_v15 = vadd.f32 %v2799_v13, %v3223_v6  ;;  %v1003_v16 = vadd.f32 %v3223_v6, %v1002_v14  ;;  %v1258_v17 = vpop.f32.mrb[33].mxu1  ;;  %v2736_v18 = vpop.f32.mrb[34].mxu0 }
 0x131   : > { %2119 = vst.msk [vmem:[%s3235_s10 + $0x174] sm:$0xf] %vm2025_vm3, %v2595_v11  ;;  %v1419_v19 = vmax.f32 %v1011_v12, 0.0  ;;  %v1259_v20 = vadd.f32 %v3223_v6, %v1258_v17  ;;  %v1014_v21 = vadd.f32 %v2736_v18, %v3223_v6  ;;  %v2800_v22 = vpop.f32.mrb[34].mxu1  ;;  %v1005_v23 = vpop.f32.mrb[35].mxu0 }
 0x132   : > { %v1483_v24 = vmax.f32 %v1267_v15, 0.0  ;;  %v1417_v25 = vmax.f32 %v1003_v16, 0.0  ;;  %v1270_v26 = vadd.f32 %v2800_v22, %v3223_v6  ;;  %v1006_v27 = vadd.f32 %v3223_v6, %v1005_v23  ;;  %v1261_v28 = vpop.f32.mrb[35].mxu1 }
 0x133   : > { %v2536_v29 = vpack.c.bf16 %v1419_v19, %v1419_v19  ;;  %v1481_v30 = vmax.f32 %v1259_v20, 0.0  ;;  %v1420_v31 = vmax.f32 %v1014_v21, 0.0  ;;  %v1262_v32 = vadd.f32 %v3223_v6, %v1261_v28 }
 0x134   : > { %v2600_v33 = vpack.c.bf16 %v1483_v24, %v1483_v24  ;;  %v2534_v34 = vpack.c.bf16 %v1417_v25, %v1417_v25  ;;  %v1484_v35 = vmax.f32 %v1270_v26, 0.0  ;;  %v1418_v36 = vmax.f32 %v1006_v27, 0.0 }
 0x135   : > { %2060 = vst.msk [vmem:[%s3235_s10 + $0x88] sm:$0xf] %vm2025_vm3, %v2536_v29  ;;  %v2598_v37 = vpack.c.bf16 %v1481_v30, %v1481_v30  ;;  %v2537_v38 = vpack.c.bf16 %v1420_v31, %v1420_v31  ;;  %v1482_v39 = vmax.f32 %v1262_v32, 0.0 }
 0x136   : > { %2124 = vst.msk [vmem:[%s3235_s10 + $0x188] sm:$0xf] %vm2025_vm3, %v2600_v33  ;;  %2058 = vst.msk [vmem:[%s3235_s10 + $0x80] sm:$0xf] %vm2025_vm3, %v2534_v34  ;;  %v2601_v40 = vpack.c.bf16 %v1484_v35, %v1484_v35  ;;  %v2535_v41 = vpack.c.bf16 %v1418_v36, %v1418_v36  ;;  %v2739_v42 = vpop.f32.mrb[36].mxu0 }
 0x137   : > { %2122 = vst.msk [vmem:[%s3235_s10 + $0x180] sm:$0xf] %vm2025_vm3, %v2598_v37  ;;  %2061 = vst.msk [vmem:[%s3235_s10 + $0x8c] sm:$0xf] %vm2025_vm3, %v2537_v38  ;;  %v2599_v43 = vpack.c.bf16 %v1482_v39, %v1482_v39  ;;  %v1027_v44 = vadd.f32 %v2739_v42, %v3223_v6  ;;  %v2803_v45 = vpop.f32.mrb[36].mxu1  ;;  %v1018_v46 = vpop.f32.mrb[37].mxu0 }
 0x138   : > { %2125 = vst.msk [vmem:[%s3235_s10 + $0x18c] sm:$0xf] %vm2025_vm3, %v2601_v40  ;;  %2059 = vst.msk [vmem:[%s3235_s10 + $0x84] sm:$0xf] %vm2025_vm3, %v2535_v41  ;;  %v1283_v47 = vadd.f32 %v2803_v45, %v3223_v6  ;;  %v1019_v48 = vadd.f32 %v3223_v6, %v1018_v46  ;;  %v1274_v49 = vpop.f32.mrb[37].mxu1  ;;  %v2740_v50 = vpop.f32.mrb[38].mxu0 }
 0x139   : > { %2123 = vst.msk [vmem:[%s3235_s10 + $0x184] sm:$0xf] %vm2025_vm3, %v2599_v43  ;;  %v1423_v51 = vmax.f32 %v1027_v44, 0.0  ;;  %v1275_v52 = vadd.f32 %v3223_v6, %v1274_v49  ;;  %v1030_v53 = vadd.f32 %v2740_v50, %v3223_v6  ;;  %v2804_v54 = vpop.f32.mrb[38].mxu1  ;;  %v1021_v55 = vpop.f32.mrb[39].mxu0 }
 0x13a   : > { %v1487_v56 = vmax.f32 %v1283_v47, 0.0  ;;  %v1421_v57 = vmax.f32 %v1019_v48, 0.0  ;;  %v1286_v58 = vadd.f32 %v2804_v54, %v3223_v6  ;;  %v1022_v59 = vadd.f32 %v3223_v6, %v1021_v55  ;;  %v1277_v60 = vpop.f32.mrb[39].mxu1 }
 0x13b   : > { %v2540_v61 = vpack.c.bf16 %v1423_v51, %v1423_v51  ;;  %v1485_v62 = vmax.f32 %v1275_v52, 0.0  ;;  %v1424_v63 = vmax.f32 %v1030_v53, 0.0  ;;  %v1278_v0 = vadd.f32 %v3223_v6, %v1277_v60 }
 0x13c   : > { %v2604_v1 = vpack.c.bf16 %v1487_v56, %v1487_v56  ;;  %v2538_v2 = vpack.c.bf16 %v1421_v57, %v1421_v57  ;;  %v1488_v3 = vmax.f32 %v1286_v58, 0.0  ;;  %v1422_v4 = vmax.f32 %v1022_v59, 0.0 }
 0x13d   : > { %2064 = vst.msk [vmem:[%s3235_s10 + $0x98] sm:$0xf] %vm2025_vm3, %v2540_v61  ;;  %v2602_v5 = vpack.c.bf16 %v1485_v62, %v1485_v62  ;;  %v2541_v7 = vpack.c.bf16 %v1424_v63, %v1424_v63  ;;  %v1486_v8 = vmax.f32 %v1278_v0, 0.0 }
 0x13e   : > { %2128 = vst.msk [vmem:[%s3235_s10 + $0x198] sm:$0xf] %vm2025_vm3, %v2604_v1  ;;  %2062 = vst.msk [vmem:[%s3235_s10 + $0x90] sm:$0xf] %vm2025_vm3, %v2538_v2  ;;  %v2605_v9 = vpack.c.bf16 %v1488_v3, %v1488_v3  ;;  %v2539_v10 = vpack.c.bf16 %v1422_v4, %v1422_v4  ;;  %v2743_v11 = vpop.f32.mrb[40].mxu0 }
 0x13f   : > { %2126 = vst.msk [vmem:[%s3235_s10 + $0x190] sm:$0xf] %vm2025_vm3, %v2602_v5  ;;  %2065 = vst.msk [vmem:[%s3235_s10 + $0x9c] sm:$0xf] %vm2025_vm3, %v2541_v7  ;;  %v2603_v12 = vpack.c.bf16 %v1486_v8, %v1486_v8  ;;  %v1043_v13 = vadd.f32 %v2743_v11, %v3223_v6  ;;  %v2807_v14 = vpop.f32.mrb[40].mxu1  ;;  %v1034_v15 = vpop.f32.mrb[41].mxu0 }
 0x140   : > { %2129 = vst.msk [vmem:[%s3235_s10 + $0x19c] sm:$0xf] %vm2025_vm3, %v2605_v9  ;;  %2063 = vst.msk [vmem:[%s3235_s10 + $0x94] sm:$0xf] %vm2025_vm3, %v2539_v10  ;;  %v1299_v16 = vadd.f32 %v2807_v14, %v3223_v6  ;;  %v1035_v17 = vadd.f32 %v3223_v6, %v1034_v15  ;;  %v1290_v18 = vpop.f32.mrb[41].mxu1  ;;  %v2744_v19 = vpop.f32.mrb[42].mxu0 }
 0x141   : > { %2127 = vst.msk [vmem:[%s3235_s10 + $0x194] sm:$0xf] %vm2025_vm3, %v2603_v12  ;;  %v1427_v20 = vmax.f32 %v1043_v13, 0.0  ;;  %v1291_v21 = vadd.f32 %v3223_v6, %v1290_v18  ;;  %v1046_v22 = vadd.f32 %v2744_v19, %v3223_v6  ;;  %v2808_v23 = vpop.f32.mrb[42].mxu1  ;;  %v1037_v24 = vpop.f32.mrb[43].mxu0 }
 0x142   : > { %v1491_v25 = vmax.f32 %v1299_v16, 0.0  ;;  %v1425_v26 = vmax.f32 %v1035_v17, 0.0  ;;  %v1302_v27 = vadd.f32 %v2808_v23, %v3223_v6  ;;  %v1038_v28 = vadd.f32 %v3223_v6, %v1037_v24  ;;  %v1293_v29 = vpop.f32.mrb[43].mxu1 }
 0x143   : > { %v2544_v30 = vpack.c.bf16 %v1427_v20, %v1427_v20  ;;  %v1489_v31 = vmax.f32 %v1291_v21, 0.0  ;;  %v1428_v32 = vmax.f32 %v1046_v22, 0.0  ;;  %v1294_v33 = vadd.f32 %v3223_v6, %v1293_v29 }
 0x144   : > { %v2608_v34 = vpack.c.bf16 %v1491_v25, %v1491_v25  ;;  %v2542_v35 = vpack.c.bf16 %v1425_v26, %v1425_v26  ;;  %v1492_v36 = vmax.f32 %v1302_v27, 0.0  ;;  %v1426_v37 = vmax.f32 %v1038_v28, 0.0 }
 0x145   : > { %2068 = vst.msk [vmem:[%s3235_s10 + $0xa8] sm:$0xf] %vm2025_vm3, %v2544_v30  ;;  %v2606_v38 = vpack.c.bf16 %v1489_v31, %v1489_v31  ;;  %v2545_v39 = vpack.c.bf16 %v1428_v32, %v1428_v32  ;;  %v1490_v40 = vmax.f32 %v1294_v33, 0.0 }
 0x146   : > { %2132 = vst.msk [vmem:[%s3235_s10 + $0x1a8] sm:$0xf] %vm2025_vm3, %v2608_v34  ;;  %2066 = vst.msk [vmem:[%s3235_s10 + $0xa0] sm:$0xf] %vm2025_vm3, %v2542_v35  ;;  %v2609_v41 = vpack.c.bf16 %v1492_v36, %v1492_v36  ;;  %v2543_v42 = vpack.c.bf16 %v1426_v37, %v1426_v37  ;;  %v2747_v43 = vpop.f32.mrb[44].mxu0 }
 0x147   : > { %2130 = vst.msk [vmem:[%s3235_s10 + $0x1a0] sm:$0xf] %vm2025_vm3, %v2606_v38  ;;  %2069 = vst.msk [vmem:[%s3235_s10 + $0xac] sm:$0xf] %vm2025_vm3, %v2545_v39  ;;  %v2607_v44 = vpack.c.bf16 %v1490_v40, %v1490_v40  ;;  %v1059_v45 = vadd.f32 %v2747_v43, %v3223_v6  ;;  %v2811_v46 = vpop.f32.mrb[44].mxu1  ;;  %v1050_v47 = vpop.f32.mrb[45].mxu0 }
 0x148   : > { %2133 = vst.msk [vmem:[%s3235_s10 + $0x1ac] sm:$0xf] %vm2025_vm3, %v2609_v41  ;;  %2067 = vst.msk [vmem:[%s3235_s10 + $0xa4] sm:$0xf] %vm2025_vm3, %v2543_v42  ;;  %v1315_v48 = vadd.f32 %v2811_v46, %v3223_v6  ;;  %v1051_v49 = vadd.f32 %v3223_v6, %v1050_v47  ;;  %v1306_v50 = vpop.f32.mrb[45].mxu1  ;;  %v2748_v51 = vpop.f32.mrb[46].mxu0 }
 0x149   : > { %2131 = vst.msk [vmem:[%s3235_s10 + $0x1a4] sm:$0xf] %vm2025_vm3, %v2607_v44  ;;  %v1431_v52 = vmax.f32 %v1059_v45, 0.0  ;;  %v1307_v53 = vadd.f32 %v3223_v6, %v1306_v50  ;;  %v1062_v54 = vadd.f32 %v2748_v51, %v3223_v6  ;;  %v2812_v55 = vpop.f32.mrb[46].mxu1  ;;  %v1053_v56 = vpop.f32.mrb[47].mxu0 }
 0x14a   : > { %v1495_v57 = vmax.f32 %v1315_v48, 0.0  ;;  %v1429_v58 = vmax.f32 %v1051_v49, 0.0  ;;  %v1318_v59 = vadd.f32 %v2812_v55, %v3223_v6  ;;  %v1054_v60 = vadd.f32 %v3223_v6, %v1053_v56  ;;  %v1309_v61 = vpop.f32.mrb[47].mxu1  ;;  %v3538_v45 = vld [vmem:[%s3672_s2] ss:$0 sm:$0xff] }
 0x14b   : > { %v2548_v62 = vpack.c.bf16 %v1431_v52, %v1431_v52  ;;  %v1493_v63 = vmax.f32 %v1307_v53, 0.0  ;;  %v1432_v0 = vmax.f32 %v1062_v54, 0.0  ;;  %v1310_v1 = vadd.f32 %v3223_v6, %v1309_v61 }
 0x14c   : > { %v2612_v2 = vpack.c.bf16 %v1495_v57, %v1495_v57  ;;  %v2546_v3 = vpack.c.bf16 %v1429_v58, %v1429_v58  ;;  %v1496_v4 = vmax.f32 %v1318_v59, 0.0  ;;  %v1430_v5 = vmax.f32 %v1054_v60, 0.0 }
 0x14d   : > { %2072 = vst.msk [vmem:[%s3235_s10 + $0xb8] sm:$0xf] %vm2025_vm3, %v2548_v62  ;;  %v2610_v7 = vpack.c.bf16 %v1493_v63, %v1493_v63  ;;  %v2549_v8 = vpack.c.bf16 %v1432_v0, %v1432_v0  ;;  %v1494_v9 = vmax.f32 %v1310_v1, 0.0 }
 0x14e   : > { %2136 = vst.msk [vmem:[%s3235_s10 + $0x1b8] sm:$0xf] %vm2025_vm3, %v2612_v2  ;;  %2070 = vst.msk [vmem:[%s3235_s10 + $0xb0] sm:$0xf] %vm2025_vm3, %v2546_v3  ;;  %v2613_v10 = vpack.c.bf16 %v1496_v4, %v1496_v4  ;;  %v2547_v11 = vpack.c.bf16 %v1430_v5, %v1430_v5  ;;  %v2751_v12 = vpop.f32.mrb[48].mxu0 }
 0x14f   : > { %2134 = vst.msk [vmem:[%s3235_s10 + $0x1b0] sm:$0xf] %vm2025_vm3, %v2610_v7  ;;  %2073 = vst.msk [vmem:[%s3235_s10 + $0xbc] sm:$0xf] %vm2025_vm3, %v2549_v8  ;;  %v2611_v13 = vpack.c.bf16 %v1494_v9, %v1494_v9  ;;  %v1075_v14 = vadd.f32 %v2751_v12, %v3223_v6  ;;  %v2815_v15 = vpop.f32.mrb[48].mxu1  ;;  %v1066_v16 = vpop.f32.mrb[49].mxu0 }
 0x150   : > { %2137 = vst.msk [vmem:[%s3235_s10 + $0x1bc] sm:$0xf] %vm2025_vm3, %v2613_v10  ;;  %2071 = vst.msk [vmem:[%s3235_s10 + $0xb4] sm:$0xf] %vm2025_vm3, %v2547_v11  ;;  %v1331_v17 = vadd.f32 %v2815_v15, %v3223_v6  ;;  %v1067_v18 = vadd.f32 %v3223_v6, %v1066_v16  ;;  %v1322_v19 = vpop.f32.mrb[49].mxu1  ;;  %v2752_v20 = vpop.f32.mrb[50].mxu0 }
 0x151   : > { %2135 = vst.msk [vmem:[%s3235_s10 + $0x1b4] sm:$0xf] %vm2025_vm3, %v2611_v13  ;;  %v1435_v21 = vmax.f32 %v1075_v14, 0.0  ;;  %v1323_v22 = vadd.f32 %v3223_v6, %v1322_v19  ;;  %v1078_v23 = vadd.f32 %v2752_v20, %v3223_v6  ;;  %v2816_v24 = vpop.f32.mrb[50].mxu1  ;;  %v1069_v25 = vpop.f32.mrb[51].mxu0 }
 0x152   : > { %v1499_v26 = vmax.f32 %v1331_v17, 0.0  ;;  %v1433_v27 = vmax.f32 %v1067_v18, 0.0  ;;  %v1334_v28 = vadd.f32 %v2816_v24, %v3223_v6  ;;  %v1070_v29 = vadd.f32 %v3223_v6, %v1069_v25  ;;  %v1325_v30 = vpop.f32.mrb[51].mxu1 }
 0x153   : > { %v2552_v31 = vpack.c.bf16 %v1435_v21, %v1435_v21  ;;  %v1497_v32 = vmax.f32 %v1323_v22, 0.0  ;;  %v1436_v33 = vmax.f32 %v1078_v23, 0.0  ;;  %v1326_v34 = vadd.f32 %v3223_v6, %v1325_v30 }
 0x154   : > { %v2616_v35 = vpack.c.bf16 %v1499_v26, %v1499_v26  ;;  %v2550_v36 = vpack.c.bf16 %v1433_v27, %v1433_v27  ;;  %v1500_v37 = vmax.f32 %v1334_v28, 0.0  ;;  %v1434_v38 = vmax.f32 %v1070_v29, 0.0 }
 0x155   : > { %2076 = vst.msk [vmem:[%s3235_s10 + $0xc8] sm:$0xf] %vm2025_vm3, %v2552_v31  ;;  %v2614_v39 = vpack.c.bf16 %v1497_v32, %v1497_v32  ;;  %v2553_v40 = vpack.c.bf16 %v1436_v33, %v1436_v33  ;;  %v1498_v41 = vmax.f32 %v1326_v34, 0.0 }
 0x156   : > { %2140 = vst.msk [vmem:[%s3235_s10 + $0x1c8] sm:$0xf] %vm2025_vm3, %v2616_v35  ;;  %2074 = vst.msk [vmem:[%s3235_s10 + $0xc0] sm:$0xf] %vm2025_vm3, %v2550_v36  ;;  %v2617_v42 = vpack.c.bf16 %v1500_v37, %v1500_v37  ;;  %v2551_v43 = vpack.c.bf16 %v1434_v38, %v1434_v38  ;;  %v2755_v44 = vpop.f32.mrb[52].mxu0 }
 0x157   : > { %2138 = vst.msk [vmem:[%s3235_s10 + $0x1c0] sm:$0xf] %vm2025_vm3, %v2614_v39  ;;  %2077 = vst.msk [vmem:[%s3235_s10 + $0xcc] sm:$0xf] %vm2025_vm3, %v2553_v40  ;;  %v2615_v6 = vpack.c.bf16 %v1498_v41, %v1498_v41  ;;  %v1091_v46 = vadd.f32 %v3538_v45, %v2755_v44  ;;  %v2819_v47 = vpop.f32.mrb[52].mxu1  ;;  %v1082_v48 = vpop.f32.mrb[53].mxu0 }
 0x158   : > { %2141 = vst.msk [vmem:[%s3235_s10 + $0x1cc] sm:$0xf] %vm2025_vm3, %v2617_v42  ;;  %2075 = vst.msk [vmem:[%s3235_s10 + $0xc4] sm:$0xf] %vm2025_vm3, %v2551_v43  ;;  %v1347_v49 = vadd.f32 %v3538_v45, %v2819_v47  ;;  %v1083_v50 = vadd.f32 %v3538_v45, %v1082_v48  ;;  %v1338_v51 = vpop.f32.mrb[53].mxu1  ;;  %v2756_v52 = vpop.f32.mrb[54].mxu0 }
 0x159   : > { %2139 = vst.msk [vmem:[%s3235_s10 + $0x1c4] sm:$0xf] %vm2025_vm3, %v2615_v6  ;;  %v1439_v53 = vmax.f32 %v1091_v46, 0.0  ;;  %v1339_v54 = vadd.f32 %v3538_v45, %v1338_v51  ;;  %v1094_v55 = vadd.f32 %v3538_v45, %v2756_v52  ;;  %v2820_v56 = vpop.f32.mrb[54].mxu1  ;;  %v1085_v57 = vpop.f32.mrb[55].mxu0 }
 0x15a   : > { %v1503_v58 = vmax.f32 %v1347_v49, 0.0  ;;  %v1437_v59 = vmax.f32 %v1083_v50, 0.0  ;;  %v1350_v60 = vadd.f32 %v3538_v45, %v2820_v56  ;;  %v1086_v61 = vadd.f32 %v3538_v45, %v1085_v57  ;;  %v1341_v62 = vpop.f32.mrb[55].mxu1 }
 0x15b   : > { %v2556_v63 = vpack.c.bf16 %v1439_v53, %v1439_v53  ;;  %v1501_v0 = vmax.f32 %v1339_v54, 0.0  ;;  %v1440_v1 = vmax.f32 %v1094_v55, 0.0  ;;  %v1342_v2 = vadd.f32 %v3538_v45, %v1341_v62 }
 0x15c   : > { %v2620_v3 = vpack.c.bf16 %v1503_v58, %v1503_v58  ;;  %v2554_v4 = vpack.c.bf16 %v1437_v59, %v1437_v59  ;;  %v1504_v5 = vmax.f32 %v1350_v60, 0.0  ;;  %v1438_v7 = vmax.f32 %v1086_v61, 0.0 }
 0x15d   : > { %2080 = vst.msk [vmem:[%s3235_s10 + $0xd8] sm:$0xf] %vm2025_vm3, %v2556_v63  ;;  %v2618_v8 = vpack.c.bf16 %v1501_v0, %v1501_v0  ;;  %v2557_v9 = vpack.c.bf16 %v1440_v1, %v1440_v1  ;;  %v1502_v10 = vmax.f32 %v1342_v2, 0.0 }
 0x15e   : > { %2144 = vst.msk [vmem:[%s3235_s10 + $0x1d8] sm:$0xf] %vm2025_vm3, %v2620_v3  ;;  %2078 = vst.msk [vmem:[%s3235_s10 + $0xd0] sm:$0xf] %vm2025_vm3, %v2554_v4  ;;  %v2621_v11 = vpack.c.bf16 %v1504_v5, %v1504_v5  ;;  %v2555_v12 = vpack.c.bf16 %v1438_v7, %v1438_v7  ;;  %v2759_v13 = vpop.f32.mrb[56].mxu0 }
 0x15f   : > { %2142 = vst.msk [vmem:[%s3235_s10 + $0x1d0] sm:$0xf] %vm2025_vm3, %v2618_v8  ;;  %2081 = vst.msk [vmem:[%s3235_s10 + $0xdc] sm:$0xf] %vm2025_vm3, %v2557_v9  ;;  %v2619_v14 = vpack.c.bf16 %v1502_v10, %v1502_v10  ;;  %v1107_v15 = vadd.f32 %v3538_v45, %v2759_v13  ;;  %v2823_v16 = vpop.f32.mrb[56].mxu1  ;;  %v1098_v17 = vpop.f32.mrb[57].mxu0 }
 0x160   : > { %2145 = vst.msk [vmem:[%s3235_s10 + $0x1dc] sm:$0xf] %vm2025_vm3, %v2621_v11  ;;  %2079 = vst.msk [vmem:[%s3235_s10 + $0xd4] sm:$0xf] %vm2025_vm3, %v2555_v12  ;;  %v1363_v18 = vadd.f32 %v3538_v45, %v2823_v16  ;;  %v1099_v19 = vadd.f32 %v3538_v45, %v1098_v17  ;;  %v1354_v20 = vpop.f32.mrb[57].mxu1  ;;  %v2760_v21 = vpop.f32.mrb[58].mxu0 }
 0x161   : > { %2143 = vst.msk [vmem:[%s3235_s10 + $0x1d4] sm:$0xf] %vm2025_vm3, %v2619_v14  ;;  %v1443_v22 = vmax.f32 %v1107_v15, 0.0  ;;  %v1355_v23 = vadd.f32 %v3538_v45, %v1354_v20  ;;  %v1110_v24 = vadd.f32 %v3538_v45, %v2760_v21  ;;  %v2824_v25 = vpop.f32.mrb[58].mxu1  ;;  %v1101_v26 = vpop.f32.mrb[59].mxu0 }
 0x162   : > { %v1507_v27 = vmax.f32 %v1363_v18, 0.0  ;;  %v1441_v28 = vmax.f32 %v1099_v19, 0.0  ;;  %v1366_v29 = vadd.f32 %v3538_v45, %v2824_v25  ;;  %v1102_v30 = vadd.f32 %v3538_v45, %v1101_v26  ;;  %v1357_v31 = vpop.f32.mrb[59].mxu1 }
 0x163   : > { %v2560_v32 = vpack.c.bf16 %v1443_v22, %v1443_v22  ;;  %v1505_v33 = vmax.f32 %v1355_v23, 0.0  ;;  %v1444_v34 = vmax.f32 %v1110_v24, 0.0  ;;  %v1358_v35 = vadd.f32 %v3538_v45, %v1357_v31 }
 0x164   : > { %v2624_v36 = vpack.c.bf16 %v1507_v27, %v1507_v27  ;;  %v2558_v37 = vpack.c.bf16 %v1441_v28, %v1441_v28  ;;  %v1508_v38 = vmax.f32 %v1366_v29, 0.0  ;;  %v1442_v39 = vmax.f32 %v1102_v30, 0.0 }
 0x165   : > { %2084 = vst.msk [vmem:[%s3235_s10 + $0xe8] sm:$0xf] %vm2025_vm3, %v2560_v32  ;;  %v2622_v40 = vpack.c.bf16 %v1505_v33, %v1505_v33  ;;  %v2561_v41 = vpack.c.bf16 %v1444_v34, %v1444_v34  ;;  %v1506_v42 = vmax.f32 %v1358_v35, 0.0 }
 0x166   : > { %2148 = vst.msk [vmem:[%s3235_s10 + $0x1e8] sm:$0xf] %vm2025_vm3, %v2624_v36  ;;  %2082 = vst.msk [vmem:[%s3235_s10 + $0xe0] sm:$0xf] %vm2025_vm3, %v2558_v37  ;;  %v2625_v43 = vpack.c.bf16 %v1508_v38, %v1508_v38  ;;  %v2559_v44 = vpack.c.bf16 %v1442_v39, %v1442_v39  ;;  %v2763_v6 = vpop.f32.mrb[60].mxu0 }
 0x167   : > { %2146 = vst.msk [vmem:[%s3235_s10 + $0x1e0] sm:$0xf] %vm2025_vm3, %v2622_v40  ;;  %2085 = vst.msk [vmem:[%s3235_s10 + $0xec] sm:$0xf] %vm2025_vm3, %v2561_v41  ;;  %v2623_v46 = vpack.c.bf16 %v1506_v42, %v1506_v42  ;;  %v1123_v47 = vadd.f32 %v3538_v45, %v2763_v6  ;;  %v2827_v48 = vpop.f32.mrb[60].mxu1  ;;  %v1114_v49 = vpop.f32.mrb[61].mxu0 }
 0x168   : > { %2149 = vst.msk [vmem:[%s3235_s10 + $0x1ec] sm:$0xf] %vm2025_vm3, %v2625_v43  ;;  %2083 = vst.msk [vmem:[%s3235_s10 + $0xe4] sm:$0xf] %vm2025_vm3, %v2559_v44  ;;  %v1379_v50 = vadd.f32 %v3538_v45, %v2827_v48  ;;  %v1115_v51 = vadd.f32 %v3538_v45, %v1114_v49  ;;  %v1370_v52 = vpop.f32.mrb[61].mxu1  ;;  %v2764_v53 = vpop.f32.mrb[62].mxu0 }
 0x169   : > { %2147 = vst.msk [vmem:[%s3235_s10 + $0x1e4] sm:$0xf] %vm2025_vm3, %v2623_v46  ;;  %v1447_v54 = vmax.f32 %v1123_v47, 0.0  ;;  %v1371_v55 = vadd.f32 %v3538_v45, %v1370_v52  ;;  %v1126_v56 = vadd.f32 %v3538_v45, %v2764_v53  ;;  %v2828_v57 = vpop.f32.mrb[62].mxu1  ;;  %v1117_v58 = vpop.f32.mrb[63].mxu0 }
 0x16a   : > { %v1511_v59 = vmax.f32 %v1379_v50, 0.0  ;;  %v1445_v60 = vmax.f32 %v1115_v51, 0.0  ;;  %v1382_v61 = vadd.f32 %v3538_v45, %v2828_v57  ;;  %v1118_v62 = vadd.f32 %v3538_v45, %v1117_v58  ;;  %v1373_v63 = vpop.f32.mrb[63].mxu1 }
 0x16b   : > { %v2564_v0 = vpack.c.bf16 %v1447_v54, %v1447_v54  ;;  %v1509_v1 = vmax.f32 %v1371_v55, 0.0  ;;  %v1448_v2 = vmax.f32 %v1126_v56, 0.0  ;;  %v1374_v3 = vadd.f32 %v3538_v45, %v1373_v63 }
 0x16c   : > { %v2628_v4 = vpack.c.bf16 %v1511_v59, %v1511_v59  ;;  %v2562_v5 = vpack.c.bf16 %v1445_v60, %v1445_v60  ;;  %v1512_v7 = vmax.f32 %v1382_v61, 0.0  ;;  %v1446_v8 = vmax.f32 %v1118_v62, 0.0 }
 0x16d   : > { %2088 = vst.msk [vmem:[%s3235_s10 + $0xf8] sm:$0xf] %vm2025_vm3, %v2564_v0  ;;  %v2626_v9 = vpack.c.bf16 %v1509_v1, %v1509_v1  ;;  %v2565_v10 = vpack.c.bf16 %v1448_v2, %v1448_v2  ;;  %v1510_v11 = vmax.f32 %v1374_v3, 0.0 }
 0x16e   : > { %2152 = vst.msk [vmem:[%s3235_s10 + $0x1f8] sm:$0xf] %vm2025_vm3, %v2628_v4  ;;  %2086 = vst.msk [vmem:[%s3235_s10 + $0xf0] sm:$0xf] %vm2025_vm3, %v2562_v5  ;;  %v2629_v45 = vpack.c.bf16 %v1512_v7, %v1512_v7  ;;  %v2563_v12 = vpack.c.bf16 %v1446_v8, %v1446_v8 }
 0x16f   : > { %2150 = vst.msk [vmem:[%s3235_s10 + $0x1f0] sm:$0xf] %vm2025_vm3, %v2626_v9  ;;  %2089 = vst.msk [vmem:[%s3235_s10 + $0xfc] sm:$0xf] %vm2025_vm3, %v2565_v10  ;;  %v2627_v13 = vpack.c.bf16 %v1510_v11, %v1510_v11 }
 0x170   : > { %2153 = vst.msk [vmem:[%s3235_s10 + $0x1fc] sm:$0xf] %vm2025_vm3, %v2629_v45  ;;  %2087 = vst.msk [vmem:[%s3235_s10 + $0xf4] sm:$0xf] %vm2025_vm3, %v2563_v12 }
 0x171   : > { %2151 = vst.msk [vmem:[%s3235_s10 + $0x1f4] sm:$0xf] %vm2025_vm3, %v2627_v13 }
 0x172   : > { %2955 = shalt.err (!%p2952_p3)
}
 0x173   : > { %s2956_s4 = scalar_lea.hbm %s3613_s25, 8192  ;;  %s2960_s7 = scalar_lea.hbm %s3673_s3, 16384 }
 0x174   : > { %p2957_p4 = scmp.ne.s32.totalorder %s3613_s25, %s2956_s4  ;;  %p2961_p9 = scmp.lt.u32.totalorder %s3613_s25, %s3673_s3 }
 0x175   : > { %p2962_p10 = scmp.lt.u32.totalorder %s2960_s7, %s2956_s4  ;;  %p2964_p12 = scmp.lt.u32.totalorder %s2956_s4, %s3613_s25 }
 0x176   : > { %p2958_p7 = pnand %p2957_p4, %p3068_p5 }
 0x177   : > { %p2963_p11 = por %p2962_p10, %p2961_p9 }
 0x178   : > { %p2959_p8 = pneg %p2958_p7 }
 0x179   : > { %p2965_p13 = por %p2964_p12, %p2963_p11 }
 0x17b   : > { %p2966_p0 = pnand %p2965_p13, %p2959_p8 }
 0x17d   : > { %2969 = shalt.err (!%p2966_p0)
}
 0x17e   : > { %s3008_s10 = smov 64   ;;  %s3009_s11 = smov 4  }
 0x17f   : > { %2833 = dma.vmem_to_hbm [thread:$0]  (%p3068_p5), %s3615_s20, 8192, %s3613_s25, %s3629_s26, %s3008_s10, %s3008_s10, %s3009_s11  }
 0x180 PF: > { %p2839_p1 = scmp.ge.s32.totalorder %s3004_s15, 2  ;;  %s2183_s17 = sand.u32 1, %s2992_s12  }
 0x181   : > { %s2184_s19 = scalar_lea.sflag [#allocation3], %s2183_s17 }
 0x182   : > { %p2836_p2 = pnand %p2839_p1, %p3072_p6 }
 0x184   : > { %2987 = dma.done.wait (!%p2836_p2), %s2184_s19, 8192  }
 0x185   : > { %2989 = vsyncadd (!%p2836_p2), %s2184_s19, 4294959104  ;;  %p13_p3 = scmp.ge.s32.totalorder %s3055_s18, 4   ;;  %s3676_s12 = smov %s2996_s13 }
 0x186   : > { %s3677_s13 = smov %s3000_s14  ;;  %s3678_s14 = smov %s3066_s21 }
 0x187   : > { %s3679_s15 = smov %s3055_s18  ;;  %15 = sbr.rel (!%p13_p3) target bundleno = 3 (0x3), region = 67 }
 0x18e   :  { %2189 = vsyncpa [#allocation3], 1 }
 0x18f   :  { %2191 = vsyncpa [#allocation3 + $0x1], 1 }

</bundles_post_ra>
